<compile_context>
chip_gen: v5e
topology: v5e:2x2
jax: 0.10.0
libtpu: 0.0.40
codegen_flags: <defaults>
</compile_context>

<pallas_src>
import functools

import numpy as np
import jax
import jax.numpy as jnp
from jax.experimental import pallas as pl
from jax.experimental.pallas import tpu as pltpu


# ----------------------------------------------------------------------------
# Kernels
# ----------------------------------------------------------------------------

def _softmax_rows(a):
    # Numerically-stable row softmax; name-reuse keeps at most two (TQ, Lq)
    # fp32 temporaries live at a time (review: softmax VMEM/vst pressure).
    a = jnp.exp(a - jnp.max(a, axis=-1, keepdims=True))
    return a / jnp.sum(a, axis=-1, keepdims=True)


def _heads_fused_kernel(attn_ref, mask_ref, v_ref, out_ref, p_ref, *,
                        matmul_dtype, slab_out):
    """grid = (B, Lq//TQ); all H heads processed per step.

    attn_ref: (1, H, TQ, Lq)   mask_ref: (1, 1, TQ, Lq)   v_ref: (1, H, Lq, Dv)
    out_ref:  (1, TQ, H*Dv) if slab_out else (1, H, TQ, Dv)
    p_ref:    (1, H, TQ, Lq)
    """
    H = attn_ref.shape[1]
    Dv = v_ref.shape[3]
    keep = mask_ref[0, 0] != 0                                # shared by all heads
    for h in range(H):                                        # H small & static
        a = jnp.where(keep, attn_ref[0, h].astype(jnp.float32), jnp.float32(-1e9))
        p = _softmax_rows(a)
        # TODO(synk): training-mode dropout (p=0.1) not applied; eval-mode identity.
        p_ref[0, h] = p.astype(p_ref.dtype)
        o = jnp.dot(p.astype(matmul_dtype), v_ref[0, h].astype(matmul_dtype),
                    preferred_element_type=jnp.float32)       # (TQ, Dv)
        if slab_out:
            out_ref[0, :, h * Dv:(h + 1) * Dv] = o.astype(out_ref.dtype)
        else:
            out_ref[0, h] = o.astype(out_ref.dtype)


def _head_grid_kernel(attn_ref, mask_ref, v_ref, out_ref, p_ref, *, matmul_dtype):
    """grid = (B, Lq//TQ, H); one head per step (long-sequence path).

    attn_ref: (1, 1, TQ, Lq)   mask_ref: (1, 1, TQ, Lq)  (h-independent -> no re-fetch)
    v_ref:    (1, H, Lq, Dv)   (index depends only on b -> fetched once per batch)
    out_ref:  (1, 1, TQ, Dv)   p_ref: (1, 1, TQ, Lq)
    """
    h = pl.program_id(2)
    keep = mask_ref[0, 0] != 0
    a = jnp.where(keep, attn_ref[0, 0].astype(jnp.float32), jnp.float32(-1e9))
    p = _softmax_rows(a)
    # TODO(synk): training-mode dropout (p=0.1) not applied; eval-mode identity.
    p_ref[0, 0] = p.astype(p_ref.dtype)
    o = jnp.dot(p.astype(matmul_dtype), v_ref[0, h].astype(matmul_dtype),
                preferred_element_type=jnp.float32)
    out_ref[0, 0] = o.astype(out_ref.dtype)


# ----------------------------------------------------------------------------
# Tiling / VMEM helpers
# ----------------------------------------------------------------------------

def _vmem_capacity_bytes():
    """Per-core VMEM (128 MiB on v5e/v6e, 64 MiB on v7x); safe fallback."""
    try:
        cap = getattr(pltpu.get_tpu_info(), "vmem_capacity_bytes", None)
        if cap:
            return int(cap)
    except Exception:
        pass
    return 128 * 1024 * 1024


def _legal_tqs(Lq):
    """Descending TQ candidates: Lq itself (full extent), plus divisors of Lq that
    are multiples of 32 (int8 mask sublane packing; also satisfies (8,128))."""
    tqs = {Lq}
    t = 32
    while t < Lq:
        if Lq % t == 0:
            tqs.add(t)
        t += 32
    return sorted(tqs, reverse=True)


def _step_bytes(heads_per_step, H, TQ, Lq, Dv, attn_isz, p_isz, mask_isz,
                v_isz, out_isz):
    """Per-grid-step VMEM: double-buffered BlockSpec I/O + in-kernel fp32
    (TQ, Lq) softmax temporaries (review item: estimate undercounted)."""
    io = (heads_per_step * TQ * Lq * attn_isz       # random_attn block
          + heads_per_step * TQ * Lq * p_isz        # p (attention) block
          + TQ * Lq * mask_isz                      # mask block
          + H * Lq * Dv * v_isz                     # V block (always all heads)
          + heads_per_step * TQ * Dv * out_isz)     # output block
    temps = 3 * TQ * Lq * 4                         # keep / a / p live temporaries
    return 2 * io + temps


def _choose_tiling(H, Lq, Dv, attn_isz, p_isz, v_isz, out_isz, budget,
                   force_head_grid):
    def est(heads, tq):
        m_isz = 1 if tq % 32 == 0 else 4
        return _step_bytes(heads, H, tq, Lq, Dv, attn_isz, p_isz, m_isz,
                           v_isz, out_isz)

    def pick(heads):
        cands = _legal_tqs(Lq)
        for tq in cands:
            if est(heads, tq) <= budget:
                return tq
        return cands[-1]                            # smallest legal; advisory only

    tq_a = pick(H)
    fits_a = est(H, tq_a) <= budget
    head_grid = force_head_grid or (H > 1 and (not fits_a or tq_a < min(Lq, 256)))
    if head_grid:
        tq, heads = pick(1), 1
    else:
        tq, heads = tq_a, H
    return head_grid, tq, est(heads, tq)


# ----------------------------------------------------------------------------
# Wrapper
# ----------------------------------------------------------------------------

@functools.partial(jax.jit, static_argnames=("len_q", "matmul_dtype", "p_dtype",
                                              "force_head_grid"))
def random_attention_forward(random_attn, v, mask, *, len_q,
                             matmul_dtype=jnp.bfloat16,
                             p_dtype=jnp.float32,
                             force_head_grid=False):
    """random_attn: (B_max, H, S_max, S_max); v: (B, H, Lq, Dv); mask: (B, 1, Lq, Lq).

    Returns (output, attn) with output: (B, H, Lq, Dv), attn: (B, H, Lq, Lq).
    """
    B, H, Lq, Dv = v.shape
    B_max, H_a, S_max, S_max2 = random_attn.shape
    assert len_q == Lq and H_a == H and S_max2 == S_max
    assert B <= B_max and Lq <= S_max
    assert mask.shape == (B, 1, Lq, Lq)

    out_dtype = v.dtype
    p_isz = np.dtype(p_dtype).itemsize

    # --- generation-aware VMEM budgeting (review items 1-3) ---
    vmem_cap = _vmem_capacity_bytes()
    budget = int(vmem_cap * 0.45)       # ~57 MiB on v5e/v6e, ~28 MiB on v7x
    limit_cap = int(vmem_cap * 0.75)    # ~96 MiB on v5e/v6e, ~48 MiB on v7x

    head_grid, TQ, est = _choose_tiling(
        H, Lq, Dv, random_attn.dtype.itemsize, p_isz, v.dtype.itemsize,
        np.dtype(out_dtype).itemsize, budget, force_head_grid)
    num_q = Lq // TQ
    vmem_limit = int(min(limit_cap,
                         max(32 * 1024 * 1024, int(est * 1.5) + (2 << 20))))

    # Fold the [:B, :, :Lq, :Lq] window into the BlockSpec when legal; otherwise
    # wrapper-side slice (extra HBM pass only for awkward shapes).
    fold_ok = ((Lq == S_max or Lq % 128 == 0) and (TQ == S_max or TQ % 8 == 0))
    attn_arr = random_attn if fold_ok else random_attn[:B, :, :Lq, :Lq]

    # int8 mask (4x less HBM than int32) only when TQ respects int8's (32,128) tile.
    mask_dtype = jnp.int8 if TQ % 32 == 0 else jnp.int32
    mask_i = (mask != 0).astype(mask_dtype)

    if not head_grid:
        # ---- heads-fused path: grid = (B, q) ----
        grid = (B, num_q)
        slab_out = (Dv % 128 != 0)
        if slab_out:  # lane-dense (TQ, H*Dv) slab, reshaped wrapper-side
            out_shape0 = jax.ShapeDtypeStruct((B, Lq, H * Dv), out_dtype)
            out_spec0 = pl.BlockSpec((1, TQ, H * Dv), lambda b, q: (b, q, 0))
        else:         # Dv already lane-dense -> write (B,H,Lq,Dv) directly
            out_shape0 = jax.ShapeDtypeStruct((B, H, Lq, Dv), out_dtype)
            out_spec0 = pl.BlockSpec((1, H, TQ, Dv), lambda b, q: (b, 0, q, 0))
        kernel = functools.partial(_heads_fused_kernel,
                                   matmul_dtype=matmul_dtype, slab_out=slab_out)
        in_specs = [
            pl.BlockSpec((1, H, TQ, Lq), lambda b, q: (b, 0, q, 0)),   # random_attn
            pl.BlockSpec((1, 1, TQ, Lq), lambda b, q: (b, 0, q, 0)),   # mask
            pl.BlockSpec((1, H, Lq, Dv), lambda b, q: (b, 0, 0, 0)),   # v (per batch)
        ]
        out_specs = [out_spec0,
                     pl.BlockSpec((1, H, TQ, Lq), lambda b, q: (b, 0, q, 0))]
        dims = ("parallel", "parallel")
    else:
        # ---- head-grid path: grid = (B, q, h), h innermost "arbitrary" ----
        grid = (B, num_q, H)
        slab_out = False
        out_shape0 = jax.ShapeDtypeStruct((B, H, Lq, Dv), out_dtype)
        out_spec0 = pl.BlockSpec((1, 1, TQ, Dv), lambda b, q, h: (b, h, q, 0))
        kernel = functools.partial(_head_grid_kernel, matmul_dtype=matmul_dtype)
        in_specs = [
            pl.BlockSpec((1, 1, TQ, Lq), lambda b, q, h: (b, h, q, 0)),  # random_attn
            pl.BlockSpec((1, 1, TQ, Lq), lambda b, q, h: (b, 0, q, 0)),  # mask (no h re-fetch)
            pl.BlockSpec((1, H, Lq, Dv), lambda b, q, h: (b, 0, 0, 0)),  # v (per batch)
        ]
        out_specs = [out_spec0,
                     pl.BlockSpec((1, 1, TQ, Lq), lambda b, q, h: (b, h, q, 0))]
        dims = ("parallel", "parallel", "arbitrary")

    out_shapes = (out_shape0, jax.ShapeDtypeStruct((B, H, Lq, Lq), p_dtype))

    f = pl.pallas_call(
        kernel,
        out_shape=out_shapes,
        grid_spec=pltpu.PrefetchScalarGridSpec(
            num_scalar_prefetch=0, grid=grid,
            in_specs=in_specs, out_specs=out_specs),
        compiler_params=pltpu.CompilerParams(
            dimension_semantics=dims, vmem_limit_bytes=vmem_limit),
    )
    out_raw, p = f(attn_arr, mask_i, v)

    if slab_out:
        # layout plumbing: (B, Lq, H*Dv) -> (B, H, Lq, Dv)
        out = out_raw.reshape(B, Lq, H, Dv).transpose(0, 2, 1, 3)
    else:
        out = out_raw
    return out, p


def _reference(random_attn, v, mask, len_q):
    B = mask.shape[0]
    attn = random_attn[:B, :, :len_q, :len_q]
    attn = jnp.where(mask == 0, -1e9, attn)
    p = jax.nn.softmax(attn, axis=-1)
    out = jnp.einsum("bhqk,bhkd->bhqd", p, v)
    return out, p


if __name__ == "__main__":
    # small shapes consistent with the module; len_q == max_seq_len exercises the
    # fold-into-BlockSpec path and H * d_v = 128 -> lane-dense output slab.
    batch_size, n_head, max_seq_len = 2, 4, 32
    len_q, d_v = 32, 32

    key = jax.random.PRNGKey(0)
    k1, k2 = jax.random.split(key, 2)

    # deterministic "parameter" (torch.randn in __init__)
    random_attn = jax.random.normal(
        k1, (batch_size, n_head, max_seq_len, max_seq_len), dtype=jnp.float32)
    v = jax.random.normal(k2, (batch_size, n_head, len_q, d_v), dtype=jnp.float32)

    # causal-style mask broadcast over heads: (B, 1, Lq, Lq), 1 = keep, 0 = mask
    causal = jnp.tril(jnp.ones((len_q, len_q), dtype=jnp.int32))
    mask = jnp.broadcast_to(causal, (batch_size, 1, len_q, len_q)).astype(jnp.int32)

    ref_out, ref_p = _reference(random_attn, v, mask, len_q)

    # heads-fused path (default layout for small/medium shapes)
    out, p = random_attention_forward(random_attn, v, mask, len_q=len_q)
    jax.block_until_ready(out)
    jax.block_until_ready(p)
    assert jnp.allclose(p, ref_p, atol=1e-4, rtol=1e-4)
    assert jnp.allclose(out, ref_out, atol=3e-2, rtol=1e-2)   # bf16 MXU operands

    # head-in-grid path (the long-sequence layout), validated at the same shapes
    out_g, p_g = random_attention_forward(random_attn, v, mask, len_q=len_q,
                                          force_head_grid=True)
    jax.block_until_ready(out_g)
    jax.block_until_ready(p_g)
    assert jnp.allclose(p_g, ref_p, atol=1e-4, rtol=1e-4)
    assert jnp.allclose(out_g, ref_out, atol=3e-2, rtol=1e-2)

    print("KERNEL_OK")
</pallas_src>

<mosaic_0001>
module attributes {stable_mosaic.version = 11 : i64} {
  func.func @_heads_fused_kernel(%arg0: i32, %arg1: i32, %arg2: memref<1x4x32x32xf32, #tpu.memory_space<vmem>>, %arg3: memref<1x1x32x32xi8, #tpu.memory_space<vmem>>, %arg4: memref<1x4x32x32xf32, #tpu.memory_space<vmem>>, %arg5: memref<1x32x128xf32, #tpu.memory_space<vmem>>, %arg6: memref<1x4x32x32xf32, #tpu.memory_space<vmem>>) attributes {dimension_semantics = [#tpu.dimension_semantics<parallel>, #tpu.dimension_semantics<parallel>], iteration_bounds = array<i64: 2, 1>, scalar_prefetch = 0 : i64, scratch_operands = 0 : i64, tpu.core_type = #tpu.core_type<tc>, window_params = [{transform_indices = @transform_0, window_bounds = array<i64: 1, 4, 32, 32>}, {transform_indices = @transform_1, window_bounds = array<i64: 1, 1, 32, 32>}, {transform_indices = @transform_2, window_bounds = array<i64: 1, 4, 32, 32>}, {transform_indices = @transform_3, window_bounds = array<i64: 1, 32, 128>}, {transform_indices = @transform_4, window_bounds = array<i64: 1, 4, 32, 32>}]} {
    %c0 = arith.constant 0 : index
    %c0_0 = arith.constant 0 : index
    %c0_1 = arith.constant 0 : index
    %c0_2 = arith.constant 0 : index
    %0 = vector.load %arg3[%c0, %c0_0, %c0_1, %c0_2] : memref<1x1x32x32xi8, #tpu.memory_space<vmem>>, vector<1x1x32x32xi8>
    %1 = vector.shape_cast %0 : vector<1x1x32x32xi8> to vector<32x32xi8>
    %c0_i8 = arith.constant 0 : i8
    %2 = vector.broadcast %c0_i8 : i8 to vector<32x32xi8>
    %3 = arith.cmpi ne, %1, %2 : vector<32x32xi8>
    %c0_3 = arith.constant 0 : index
    %c0_4 = arith.constant 0 : index
    %c0_5 = arith.constant 0 : index
    %c0_6 = arith.constant 0 : index
    %4 = vector.load %arg2[%c0_3, %c0_4, %c0_5, %c0_6] : memref<1x4x32x32xf32, #tpu.memory_space<vmem>>, vector<1x1x32x32xf32>
    %5 = vector.shape_cast %4 : vector<1x1x32x32xf32> to vector<32x32xf32>
    %cst = arith.constant -1.000000e+09 : f32
    %6 = vector.broadcast %cst : f32 to vector<32x32xf32>
    %7 = arith.select %3, %5, %6 : vector<32x32xi1>, vector<32x32xf32>
    %cst_7 = arith.constant dense<0xFF800000> : vector<32xf32>
    %8 = vector.multi_reduction <maximumf>, %7, %cst_7 [1] : vector<32x32xf32> to vector<32xf32>
    %9 = vector.shape_cast %8 : vector<32xf32> to vector<32x1xf32>
    %10 = vector.broadcast %9 : vector<32x1xf32> to vector<32x32xf32>
    %11 = arith.subf %7, %10 : vector<32x32xf32>
    %12 = math.exp %11 : vector<32x32xf32>
    %cst_8 = arith.constant dense<0.000000e+00> : vector<32xf32>
    %13 = vector.multi_reduction <add>, %12, %cst_8 [1] : vector<32x32xf32> to vector<32xf32>
    %14 = vector.shape_cast %13 : vector<32xf32> to vector<32x1xf32>
    %15 = vector.broadcast %14 : vector<32x1xf32> to vector<32x32xf32>
    %16 = arith.divf %12, %15 : vector<32x32xf32>
    %c0_9 = arith.constant 0 : index
    %c0_10 = arith.constant 0 : index
    %c0_11 = arith.constant 0 : index
    %c0_12 = arith.constant 0 : index
    %17 = vector.load %arg6[%c0_9, %c0_10, %c0_11, %c0_12] : memref<1x4x32x32xf32, #tpu.memory_space<vmem>>, vector<1x1x32x32xf32>
    %18 = vector.shape_cast %17 : vector<1x1x32x32xf32> to vector<32x32xf32>
    %19 = vector.shape_cast %16 : vector<32x32xf32> to vector<1x1x32x32xf32>
    tpu.vector_store %arg6[%c0_9, %c0_10, %c0_11, %c0_12], %19 {strides = array<i32>} : memref<1x4x32x32xf32, #tpu.memory_space<vmem>>, vector<1x1x32x32xf32>,
    %20 = arith.truncf %16 : vector<32x32xf32> to vector<32x32xbf16>
    %c0_13 = arith.constant 0 : index
    %c0_14 = arith.constant 0 : index
    %c0_15 = arith.constant 0 : index
    %c0_16 = arith.constant 0 : index
    %21 = vector.load %arg4[%c0_13, %c0_14, %c0_15, %c0_16] : memref<1x4x32x32xf32, #tpu.memory_space<vmem>>, vector<1x1x32x32xf32>
    %22 = vector.shape_cast %21 : vector<1x1x32x32xf32> to vector<32x32xf32>
    %23 = arith.truncf %22 : vector<32x32xf32> to vector<32x32xbf16>
    %cst_17 = arith.constant dense<0.000000e+00> : vector<32x32xf32>
    %24 = tpu.matmul %20, %23, %cst_17 {dimension_numbers = #tpu.dot_dimension_numbers<[1], [0], [0], [1], [0, 0, 1, 1], [], []>} : vector<32x32xbf16>, vector<32x32xbf16>, vector<32x32xf32> -> vector<32x32xf32>
    %c0_18 = arith.constant 0 : index
    %c0_19 = arith.constant 0 : index
    %c0_20 = arith.constant 0 : index
    %25 = vector.load %arg5[%c0_18, %c0_19, %c0_20] : memref<1x32x128xf32, #tpu.memory_space<vmem>>, vector<1x32x32xf32>
    %26 = vector.shape_cast %25 : vector<1x32x32xf32> to vector<32x32xf32>
    %27 = vector.shape_cast %24 : vector<32x32xf32> to vector<1x32x32xf32>
    tpu.vector_store %arg5[%c0_18, %c0_19, %c0_20], %27 {strides = array<i32>} : memref<1x32x128xf32, #tpu.memory_space<vmem>>, vector<1x32x32xf32>,
    %c0_21 = arith.constant 0 : index
    %c1 = arith.constant 1 : index
    %c0_22 = arith.constant 0 : index
    %c0_23 = arith.constant 0 : index
    %28 = vector.load %arg2[%c0_21, %c1, %c0_22, %c0_23] : memref<1x4x32x32xf32, #tpu.memory_space<vmem>>, vector<1x1x32x32xf32>
    %29 = vector.shape_cast %28 : vector<1x1x32x32xf32> to vector<32x32xf32>
    %cst_24 = arith.constant -1.000000e+09 : f32
    %30 = vector.broadcast %cst_24 : f32 to vector<32x32xf32>
    %31 = arith.select %3, %29, %30 : vector<32x32xi1>, vector<32x32xf32>
    %cst_25 = arith.constant dense<0xFF800000> : vector<32xf32>
    %32 = vector.multi_reduction <maximumf>, %31, %cst_25 [1] : vector<32x32xf32> to vector<32xf32>
    %33 = vector.shape_cast %32 : vector<32xf32> to vector<32x1xf32>
    %34 = vector.broadcast %33 : vector<32x1xf32> to vector<32x32xf32>
    %35 = arith.subf %31, %34 : vector<32x32xf32>
    %36 = math.exp %35 : vector<32x32xf32>
    %cst_26 = arith.constant dense<0.000000e+00> : vector<32xf32>
    %37 = vector.multi_reduction <add>, %36, %cst_26 [1] : vector<32x32xf32> to vector<32xf32>
    %38 = vector.shape_cast %37 : vector<32xf32> to vector<32x1xf32>
    %39 = vector.broadcast %38 : vector<32x1xf32> to vector<32x32xf32>
    %40 = arith.divf %36, %39 : vector<32x32xf32>
    %c0_27 = arith.constant 0 : index
    %c1_28 = arith.constant 1 : index
    %c0_29 = arith.constant 0 : index
    %c0_30 = arith.constant 0 : index
    %41 = vector.load %arg6[%c0_27, %c1_28, %c0_29, %c0_30] : memref<1x4x32x32xf32, #tpu.memory_space<vmem>>, vector<1x1x32x32xf32>
    %42 = vector.shape_cast %41 : vector<1x1x32x32xf32> to vector<32x32xf32>
    %43 = vector.shape_cast %40 : vector<32x32xf32> to vector<1x1x32x32xf32>
    tpu.vector_store %arg6[%c0_27, %c1_28, %c0_29, %c0_30], %43 {strides = array<i32>} : memref<1x4x32x32xf32, #tpu.memory_space<vmem>>, vector<1x1x32x32xf32>,
    %44 = arith.truncf %40 : vector<32x32xf32> to vector<32x32xbf16>
    %c0_31 = arith.constant 0 : index
    %c1_32 = arith.constant 1 : index
    %c0_33 = arith.constant 0 : index
    %c0_34 = arith.constant 0 : index
    %45 = vector.load %arg4[%c0_31, %c1_32, %c0_33, %c0_34] : memref<1x4x32x32xf32, #tpu.memory_space<vmem>>, vector<1x1x32x32xf32>
    %46 = vector.shape_cast %45 : vector<1x1x32x32xf32> to vector<32x32xf32>
    %47 = arith.truncf %46 : vector<32x32xf32> to vector<32x32xbf16>
    %cst_35 = arith.constant dense<0.000000e+00> : vector<32x32xf32>
    %48 = tpu.matmul %44, %47, %cst_35 {dimension_numbers = #tpu.dot_dimension_numbers<[1], [0], [0], [1], [0, 0, 1, 1], [], []>} : vector<32x32xbf16>, vector<32x32xbf16>, vector<32x32xf32> -> vector<32x32xf32>
    %c0_36 = arith.constant 0 : index
    %c0_37 = arith.constant 0 : index
    %c32 = arith.constant 32 : index
    %49 = vector.load %arg5[%c0_36, %c0_37, %c32] : memref<1x32x128xf32, #tpu.memory_space<vmem>>, vector<1x32x32xf32>
    %50 = vector.shape_cast %49 : vector<1x32x32xf32> to vector<32x32xf32>
    %51 = vector.shape_cast %48 : vector<32x32xf32> to vector<1x32x32xf32>
    tpu.vector_store %arg5[%c0_36, %c0_37, %c32], %51 {strides = array<i32>} : memref<1x32x128xf32, #tpu.memory_space<vmem>>, vector<1x32x32xf32>,
    %c0_38 = arith.constant 0 : index
    %c2 = arith.constant 2 : index
    %c0_39 = arith.constant 0 : index
    %c0_40 = arith.constant 0 : index
    %52 = vector.load %arg2[%c0_38, %c2, %c0_39, %c0_40] : memref<1x4x32x32xf32, #tpu.memory_space<vmem>>, vector<1x1x32x32xf32>
    %53 = vector.shape_cast %52 : vector<1x1x32x32xf32> to vector<32x32xf32>
    %cst_41 = arith.constant -1.000000e+09 : f32
    %54 = vector.broadcast %cst_41 : f32 to vector<32x32xf32>
    %55 = arith.select %3, %53, %54 : vector<32x32xi1>, vector<32x32xf32>
    %cst_42 = arith.constant dense<0xFF800000> : vector<32xf32>
    %56 = vector.multi_reduction <maximumf>, %55, %cst_42 [1] : vector<32x32xf32> to vector<32xf32>
    %57 = vector.shape_cast %56 : vector<32xf32> to vector<32x1xf32>
    %58 = vector.broadcast %57 : vector<32x1xf32> to vector<32x32xf32>
    %59 = arith.subf %55, %58 : vector<32x32xf32>
    %60 = math.exp %59 : vector<32x32xf32>
    %cst_43 = arith.constant dense<0.000000e+00> : vector<32xf32>
    %61 = vector.multi_reduction <add>, %60, %cst_43 [1] : vector<32x32xf32> to vector<32xf32>
    %62 = vector.shape_cast %61 : vector<32xf32> to vector<32x1xf32>
    %63 = vector.broadcast %62 : vector<32x1xf32> to vector<32x32xf32>
    %64 = arith.divf %60, %63 : vector<32x32xf32>
    %c0_44 = arith.constant 0 : index
    %c2_45 = arith.constant 2 : index
    %c0_46 = arith.constant 0 : index
    %c0_47 = arith.constant 0 : index
    %65 = vector.load %arg6[%c0_44, %c2_45, %c0_46, %c0_47] : memref<1x4x32x32xf32, #tpu.memory_space<vmem>>, vector<1x1x32x32xf32>
    %66 = vector.shape_cast %65 : vector<1x1x32x32xf32> to vector<32x32xf32>
    %67 = vector.shape_cast %64 : vector<32x32xf32> to vector<1x1x32x32xf32>
    tpu.vector_store %arg6[%c0_44, %c2_45, %c0_46, %c0_47], %67 {strides = array<i32>} : memref<1x4x32x32xf32, #tpu.memory_space<vmem>>, vector<1x1x32x32xf32>,
    %68 = arith.truncf %64 : vector<32x32xf32> to vector<32x32xbf16>
    %c0_48 = arith.constant 0 : index
    %c2_49 = arith.constant 2 : index
    %c0_50 = arith.constant 0 : index
    %c0_51 = arith.constant 0 : index
    %69 = vector.load %arg4[%c0_48, %c2_49, %c0_50, %c0_51] : memref<1x4x32x32xf32, #tpu.memory_space<vmem>>, vector<1x1x32x32xf32>
    %70 = vector.shape_cast %69 : vector<1x1x32x32xf32> to vector<32x32xf32>
    %71 = arith.truncf %70 : vector<32x32xf32> to vector<32x32xbf16>
    %cst_52 = arith.constant dense<0.000000e+00> : vector<32x32xf32>
    %72 = tpu.matmul %68, %71, %cst_52 {dimension_numbers = #tpu.dot_dimension_numbers<[1], [0], [0], [1], [0, 0, 1, 1], [], []>} : vector<32x32xbf16>, vector<32x32xbf16>, vector<32x32xf32> -> vector<32x32xf32>
    %c0_53 = arith.constant 0 : index
    %c0_54 = arith.constant 0 : index
    %c64 = arith.constant 64 : index
    %73 = vector.load %arg5[%c0_53, %c0_54, %c64] : memref<1x32x128xf32, #tpu.memory_space<vmem>>, vector<1x32x32xf32>
    %74 = vector.shape_cast %73 : vector<1x32x32xf32> to vector<32x32xf32>
    %75 = vector.shape_cast %72 : vector<32x32xf32> to vector<1x32x32xf32>
    tpu.vector_store %arg5[%c0_53, %c0_54, %c64], %75 {strides = array<i32>} : memref<1x32x128xf32, #tpu.memory_space<vmem>>, vector<1x32x32xf32>,
    %c0_55 = arith.constant 0 : index
    %c3 = arith.constant 3 : index
    %c0_56 = arith.constant 0 : index
    %c0_57 = arith.constant 0 : index
    %76 = vector.load %arg2[%c0_55, %c3, %c0_56, %c0_57] : memref<1x4x32x32xf32, #tpu.memory_space<vmem>>, vector<1x1x32x32xf32>
    %77 = vector.shape_cast %76 : vector<1x1x32x32xf32> to vector<32x32xf32>
    %cst_58 = arith.constant -1.000000e+09 : f32
    %78 = vector.broadcast %cst_58 : f32 to vector<32x32xf32>
    %79 = arith.select %3, %77, %78 : vector<32x32xi1>, vector<32x32xf32>
    %cst_59 = arith.constant dense<0xFF800000> : vector<32xf32>
    %80 = vector.multi_reduction <maximumf>, %79, %cst_59 [1] : vector<32x32xf32> to vector<32xf32>
    %81 = vector.shape_cast %80 : vector<32xf32> to vector<32x1xf32>
    %82 = vector.broadcast %81 : vector<32x1xf32> to vector<32x32xf32>
    %83 = arith.subf %79, %82 : vector<32x32xf32>
    %84 = math.exp %83 : vector<32x32xf32>
    %cst_60 = arith.constant dense<0.000000e+00> : vector<32xf32>
    %85 = vector.multi_reduction <add>, %84, %cst_60 [1] : vector<32x32xf32> to vector<32xf32>
    %86 = vector.shape_cast %85 : vector<32xf32> to vector<32x1xf32>
    %87 = vector.broadcast %86 : vector<32x1xf32> to vector<32x32xf32>
    %88 = arith.divf %84, %87 : vector<32x32xf32>
    %c0_61 = arith.constant 0 : index
    %c3_62 = arith.constant 3 : index
    %c0_63 = arith.constant 0 : index
    %c0_64 = arith.constant 0 : index
    %89 = vector.load %arg6[%c0_61, %c3_62, %c0_63, %c0_64] : memref<1x4x32x32xf32, #tpu.memory_space<vmem>>, vector<1x1x32x32xf32>
    %90 = vector.shape_cast %89 : vector<1x1x32x32xf32> to vector<32x32xf32>
    %91 = vector.shape_cast %88 : vector<32x32xf32> to vector<1x1x32x32xf32>
    tpu.vector_store %arg6[%c0_61, %c3_62, %c0_63, %c0_64], %91 {strides = array<i32>} : memref<1x4x32x32xf32, #tpu.memory_space<vmem>>, vector<1x1x32x32xf32>,
    %92 = arith.truncf %88 : vector<32x32xf32> to vector<32x32xbf16>
    %c0_65 = arith.constant 0 : index
    %c3_66 = arith.constant 3 : index
    %c0_67 = arith.constant 0 : index
    %c0_68 = arith.constant 0 : index
    %93 = vector.load %arg4[%c0_65, %c3_66, %c0_67, %c0_68] : memref<1x4x32x32xf32, #tpu.memory_space<vmem>>, vector<1x1x32x32xf32>
    %94 = vector.shape_cast %93 : vector<1x1x32x32xf32> to vector<32x32xf32>
    %95 = arith.truncf %94 : vector<32x32xf32> to vector<32x32xbf16>
    %cst_69 = arith.constant dense<0.000000e+00> : vector<32x32xf32>
    %96 = tpu.matmul %92, %95, %cst_69 {dimension_numbers = #tpu.dot_dimension_numbers<[1], [0], [0], [1], [0, 0, 1, 1], [], []>} : vector<32x32xbf16>, vector<32x32xbf16>, vector<32x32xf32> -> vector<32x32xf32>
    %c0_70 = arith.constant 0 : index
    %c0_71 = arith.constant 0 : index
    %c96 = arith.constant 96 : index
    %97 = vector.load %arg5[%c0_70, %c0_71, %c96] : memref<1x32x128xf32, #tpu.memory_space<vmem>>, vector<1x32x32xf32>
    %98 = vector.shape_cast %97 : vector<1x32x32xf32> to vector<32x32xf32>
    %99 = vector.shape_cast %96 : vector<32x32xf32> to vector<1x32x32xf32>
    tpu.vector_store %arg5[%c0_70, %c0_71, %c96], %99 {strides = array<i32>} : memref<1x32x128xf32, #tpu.memory_space<vmem>>, vector<1x32x32xf32>,
    return
  }
  func.func @transform_0(%arg0: i32, %arg1: i32) -> (i32, i32, i32, i32) {
    %c0_i32 = arith.constant 0 : i32
    %c0_i32_0 = arith.constant 0 : i32
    %c0_i32_1 = arith.constant 0 : i32
    return %arg0, %c0_i32, %arg1, %c0_i32_0 : i32, i32, i32, i32
  }
  func.func @transform_1(%arg0: i32, %arg1: i32) -> (i32, i32, i32, i32) {
    %c0_i32 = arith.constant 0 : i32
    %c0_i32_0 = arith.constant 0 : i32
    %c0_i32_1 = arith.constant 0 : i32
    return %arg0, %c0_i32, %arg1, %c0_i32_0 : i32, i32, i32, i32
  }
  func.func @transform_2(%arg0: i32, %arg1: i32) -> (i32, i32, i32, i32) {
    %c0_i32 = arith.constant 0 : i32
    %c0_i32_0 = arith.constant 0 : i32
    %c0_i32_1 = arith.constant 0 : i32
    %c0_i32_2 = arith.constant 0 : i32
    return %arg0, %c0_i32, %c0_i32_0, %c0_i32_1 : i32, i32, i32, i32
  }
  func.func @transform_3(%arg0: i32, %arg1: i32) -> (i32, i32, i32) {
    %c0_i32 = arith.constant 0 : i32
    %c0_i32_0 = arith.constant 0 : i32
    return %arg0, %arg1, %c0_i32 : i32, i32, i32
  }
  func.func @transform_4(%arg0: i32, %arg1: i32) -> (i32, i32, i32, i32) {
    %c0_i32 = arith.constant 0 : i32
    %c0_i32_0 = arith.constant 0 : i32
    %c0_i32_1 = arith.constant 0 : i32
    return %arg0, %c0_i32, %arg1, %c0_i32_0 : i32, i32, i32, i32
  }
}

</mosaic_0001>

<bundles_post_ra>
// kernel: random_attention_forward.1
= control target key start
LH: loop header
LB: loop body
LE: loop exit
PB: predicated region body
PF: predicated region fallthrough
CT: control target
= control target key end

     0   :  { %s2472_s0 = inlined_call_operand.hbm [shape: f32[2,4,32,32], index: 0, kind: input, shape index: {}]   ;;  %s2473_s1 = inlined_call_operand.vmem [shape: s8[2,1,32,32], index: 1, kind: input, shape index: {}]   ;;  %s2474_s2 = inlined_call_operand.hbm [shape: f32[2,4,32,32], index: 2, kind: input, shape index: {}]   ;;  %s2475_s3 = inlined_call_operand.vmem [shape: f32[2,32,128], index: 3, kind: output, shape index: {0}]   ;;  %s2476_s4 = inlined_call_operand.hbm [shape: f32[2,4,32,32], index: 4, kind: output, shape index: {1}]  }
   0x1   :  { %2479 = sst [smem:[#allocation12_spill]] %s2472_s0 }
   0x2   :  { %10 = vsyncpa [#allocation3], 0 }
   0x3   :  { %12 = vsyncpa [#allocation3 + $0x1], 0 }
   0x4   :  { %13 = vsyncpa [#allocation6], 0 }
   0x5   :  { %15 = vsyncpa [#allocation6 + $0x1], 0 }
   0x6   :  { %16 = vsyncpa [#allocation4], 0 }
   0x7   :  { %18 = vsyncpa [#allocation4 + $0x1], 0  ;;  %s1590_s15 = smov 0   ;;  %s1592_s16 = smov 0  }
   0x8   :  { %s1594_s17 = smov 0   ;;  %s1596_s18 = smov 0  }
   0x9   :  { %s1598_s19 = smov 0   ;;  %s1600_s20 = smov 0  }
   0xa LB: > { %s1200_s21 = sadd.s32 4294967295, %s1555_s20   ;;  %s1201_s22 = sadd.s32 4294967294, %s1555_s20   ;;  %s1555_s20 = sphi %s1600_s20, %s24_s20   ;;  %s1551_s19 = sphi %s1598_s19, %s2577_s19   ;;  %s1547_s18 = sphi %s1596_s18, %s2576_s18   ;;  %s1543_s17 = sphi %s1594_s17, %s2575_s17   ;;  %s1539_s16 = sphi %s1592_s16, %s2574_s16   ;;  %s1535_s15 = sphi %s1590_s15, %s2573_s15  }
   0xb   : > { %s36_s23 = sadd.s32 1, %s1551_s19  ;;  %s45_s24 = sadd.s32 1, %s1543_s17 }
   0xc   : > { %p38_p0 = scmp.ge.s32.totalorder %s36_s23, 2  ;;  %p52_p1 = scmp.ne.s32.totalorder %s1543_s17, %s1539_s16 }
   0xd   : > { %p53_p2 = scmp.eq.s32.totalorder %s1555_s20, 0  ;;  %p58_p3 = scmp.ne.s32.totalorder %s1539_s16, %s1535_s15 }
   0xe   : > { %s2579_s23 = smov (%p38_p0, %s36_s23), 0  ;;  %p59_p5 = scmp.eq.s32.totalorder %s1200_s21, 0 }
   0xf   : > { %2480 = sst [smem:[#allocation11_spill]] %s2579_s23  ;;  %p1631_p4 = por %p53_p2, %p52_p1 }
  0x10   : > { %s40_s26 = ssub.s32 %s1551_s19, %s2579_s23  ;;  %p166_p6 = scmp.eq.s32.totalorder %s1200_s21, 1 }
  0x11   : > { %p43_p7 = scmp.eq.s32.totalorder %s40_s26, 0  ;;  %p1637_p8 = por %p59_p5, %p58_p3 }
  0x12   : > { %p1641_p9 = por %p166_p6, %p52_p1  ;;  %p172_p10 = scmp.eq.s32.totalorder %s1201_s22, 1 }
  0x13   : > { %s1646_s29 = scalar_select %p43_p7, %s1543_s17, %s45_s24  }
  0x14   : > { %p1648_p11 = por %p172_p10, %p58_p3  ;;  %p1203_p12 = scmp.ge.s32.totalorder %s1555_s20, 2 }
  0x15   : > { %p1287_p13 = scmp.lt.s32.totalorder %s1555_s20, 2  ;;  %s1655_s5 = sand.u32 1, %s1543_s17  }
  0x16   : > { %s1204_s6 = sshll.u32 %s1655_s5, 7  ;;  %s1266_s7 = sshll.u32 %s1551_s19, 7 }
  0x17   : > { %s2485_s0 = sld [smem:[#allocation12_spill]]  ;;  %s196_s11 = scalar_lea.vmem [#allocation2], %s1204_s6 }
  0x18   : > { %s206_s12 = sshll.u32 %s196_s11, 4  ;;  %p1664_p0 = pnand %p1287_p13, %p1631_p4  ;;  %s207_s12 = int_to_ptr.vmem [resolvable:$true] %s206_s12 }
  0x19   : > { %p1210_p1 = scmp.ge.s32.totalorder %s1555_s20, 1  ;;  %s193_s21 = scalar_lea.sflag [#allocation3], %s1655_s5 }
  0x1a   : > { %s1557_s22 = smov 128   ;;  %s1558_s24 = smov 8  }
  0x1b   : > { %p246_p2 = scmp.lt.s32.totalorder %s1555_s20, 3  ;;  %s235_s9 = scalar_lea.hbm %s2474_s2, %s1266_s7 }
  0x1c   : > { %s230_s25 = scalar_lea.vmem [#allocation5], %s1204_s6 }
  0x1d   : > { %s203_s10 = scalar_lea.hbm %s2485_s0, %s1266_s7  ;;  %p247_p3 = pnand %p1210_p1, %p246_p2 }
  0x1e   : > { %s204_s13 = sshll.u32 %s203_s10, 4  ;;  %s236_s10 = sshll.u32 %s235_s9, 4  ;;  %s205_s13 = int_to_ptr.hbm [resolvable:$true] %s204_s13  ;;  %s237_s10 = int_to_ptr.hbm [resolvable:$true] %s236_s10 }
  0x1f   : > { %1279 = dma.hbm_to_vmem [thread:$0]  (!%p1664_p0), %s205_s13, 2048, %s207_s12, %s193_s21, %s1557_s22, %s1557_s22, %s1558_s24  }
  0x20   : > { %s238_s11 = sshll.u32 %s230_s25, 4  ;;  %s227_s0 = scalar_lea.sflag [#allocation6], %s1655_s5  ;;  %s239_s11 = int_to_ptr.vmem [resolvable:$true] %s238_s11 }
  0x21   : > { %1282 = dma.hbm_to_vmem [thread:$0]  (!%p1664_p0), %s237_s10, 2048, %s239_s11, %s227_s0, %s1557_s22, %s1557_s22, %s1558_s24  }
  0x22   : > { %250 = sbr.rel (%p247_p3) target bundleno = 636 (0x27c), region = 32  ;;  %s1680_s23 = sand.u32 (!%p247_p3), 1, %s1539_s16  }
  0x23   : > { %s1683_s12 = sshll.u32 (!%p247_p3), %s1680_s23, 7  ;;  %s253_s7 = scalar_lea.sflag (!%p247_p3), [#allocation3], %s1680_s23 }
  0x24   : > { %s1687_s13 = scalar_lea.vmem (!%p247_p3), [#allocation2], %s1683_s12 }
  0x27   : > { %1522 = dma.done.wait (%p1637_p8), %s253_s7, 2048  }
  0x28   : > { %1524 = vsyncadd (%p1637_p8), %s253_s7, 4294965248  ;;  %s263_s0 = scalar_lea.sflag [#allocation6], %s1680_s23  ;;  %s1695_s5 = scalar_lea.vmem [#allocation5], %s1683_s12 }
  0x29   : > { %1526 = dma.done.wait (%p1637_p8), %s263_s0, 2048  }
  0x2a   : > { %1528 = vsyncadd (%p1637_p8), %s263_s0, 4294965248  ;;  %p314_p4 = scmp.lt.s32.totalorder %s1547_s18, 1  ;;  %v1559_v1 = vmov 0   ;;  %v1247_v18 = vld [vmem:[%s1687_s13 + $0x60] sm:$0xff]  ;;  %vm2478_vm3 = vcmask 261120   ;;  %v1248_v30 = vld [vmem:[%s1687_s13 + $0x68] sm:$0xff] }
  0x2b   : > { %v1233_v19 = vld [vmem:[%s1687_s13 + $0x40] sm:$0xff]  ;;  %v1234_v31 = vld [vmem:[%s1687_s13 + $0x48] sm:$0xff]  ;;  %v1235_v44 = vld [vmem:[%s1687_s13 + $0x50] sm:$0xff]  ;;  %s1979_s27 = scalar_lea.vmem [#allocation7], %s1683_s12  ;;  %s1560_s26 = smov 64  }
  0x2c   : > { %s1703_s6 = scalar_select %p314_p4, %s1547_s18, 1  ;;  %v1219_v20 = vld [vmem:[%s1687_s13 + $0x20] sm:$0xff]  ;;  %v1220_v32 = vld [vmem:[%s1687_s13 + $0x28] sm:$0xff]  ;;  %v1236_v46 = vld [vmem:[%s1687_s13 + $0x58] sm:$0xff] }
  0x2d   : > { %v1249_v47 = vld [vmem:[%s1687_s13 + $0x70] sm:$0xff]  ;;  %v1250_v54 = vld [vmem:[%s1687_s13 + $0x78] sm:$0xff]  ;;  %v337_v63 = vld [vmem:[%s1687_s13] sm:$0xff]  ;;  %s1561_s8 = smov 32   ;;  %s1562_s12 = smov 96  }
  0x2e   : > { %s1214_s14 = sshll.u32 %s1703_s6, 3  ;;  %v1221_v55 = vld [vmem:[%s1687_s13 + $0x30] sm:$0xff]  ;;  %v1222_v56 = vld [vmem:[%s1687_s13 + $0x38] sm:$0xff]  ;;  %s1268_s9 = sshll.u32 %s1703_s6, 5 }
  0x2f   : > { %s320_s24 = scalar_lea.vmem %s2473_s1, %s1214_s14  ;;  %s2392_s11 = scalar_lea.vmem %s2475_s3, %s1268_s9 }
  0x30   : > { %v335_v0 = vld [vmem:[%s320_s24] sm:$0xff]  ;;  %s1269_s7 = sshll.u32 %s1547_s18, 7  ;;  %s1035_s6 = sshll.u32 %s1979_s27, 4  ;;  %s1036_s6 = int_to_ptr.vmem [resolvable:$true] %s1035_s6 }
  0x31   : > { %vm336_vm0 = vnez %v335_v0  ;;  %v338_v0 = vld [vmem:[%s1687_s13 + $0x8] sm:$0xff]  ;;  %s1017_s21 = scalar_lea.sflag [#allocation4], %s1680_s23 }
  0x32   : > { %v341_v2 = vsel %vm336_vm0, 16843009, %v1559_v1 }
  0x33   : > { %v342_v3 = vunpack.c.0.s8 %v341_v2  ;;  %v343_v4 = vunpack.c.1.s8 %v341_v2  ;;  %v344_v5 = vunpack.c.2.s8 %v341_v2  ;;  %v345_v6 = vunpack.c.3.s8 %v341_v2 }
  0x35   : > { %v346_v7 = vpack.c.b16 %v342_v3, %v342_v3  ;;  %v348_v8 = vpack.c.b16 %v343_v4, %v343_v4  ;;  %v350_v9 = vpack.c.b16 %v344_v5, %v344_v5  ;;  %v352_v10 = vpack.c.b16 %v345_v6, %v345_v6 }
  0x37   : > { %v347_v11 = vpack.c.b8 %v346_v7, %v346_v7  ;;  %v349_v12 = vpack.c.b8 %v348_v8, %v348_v8  ;;  %v351_v13 = vpack.c.b8 %v350_v9, %v350_v9  ;;  %v353_v14 = vpack.c.b8 %v352_v10, %v352_v10 }
  0x39   : > { %vm354_vm1 = vnez %v347_v11  ;;  %vm355_vm2 = vnez %v349_v12  ;;  %vm356_vm5 = vnez %v351_v13  ;;  %vm357_vm6 = vnez %v353_v14 }
  0x3a   : > { %v358_v15 = vsel %vm354_vm1, 16843009, %v1559_v1  ;;  %v359_v16 = vsel %vm355_vm2, 16843009, %v1559_v1  ;;  %v360_v33 = vsel %vm356_vm5, 16843009, %v1559_v1 }
  0x3b   : > { %v362_v17 = vunpack.c.0.s8 %v358_v15  ;;  %v363_v21 = vunpack.c.0.s8 %v359_v16  ;;  %v361_v34 = vsel %vm357_vm6, 16843009, %v1559_v1  ;;  %v364_v38 = vunpack.c.0.s8 %v360_v33 }
  0x3c   : > { %v365_v39 = vunpack.c.0.s8 %v361_v34 }
  0x3d   : > { %vm1712_vm4 = vcmp.ne.s32.totalorder %v362_v17, 0  ;;  %vm1734_vm7 = vcmp.ne.s32.totalorder %v363_v21, 0  ;;  %vm1750_vm8 = vcmp.ne.s32.totalorder %v364_v38, 0  ;;  %v339_v38 = vld [vmem:[%s1687_s13 + $0x10] sm:$0xff] }
  0x3e   : > { %v1718_v23 = vsel %vm1712_vm4, %v1247_v18, -1e+09  ;;  %v1722_v24 = vsel %vm1712_vm4, %v1233_v19, -1e+09  ;;  %v1726_v25 = vsel %vm1712_vm4, %v1219_v20, -1e+09 }
  0x3f   : > { %v851_v26 = vsel %vm2478_vm3, %v1718_v23, -inf  ;;  %v686_v27 = vsel %vm2478_vm3, %v1722_v24, -inf  ;;  %v521_v28 = vsel %vm2478_vm3, %v1726_v25, -inf  ;;  %v848_v35 = vsel %vm1734_vm7, %v1248_v30, -1e+09 }
  0x40   : > { %852 = vmax.xlane.f32.xlu1 %v851_v26  ;;  %687 = vmax.xlane.f32.xlu0 %v686_v27  ;;  %v683_v36 = vsel %vm1734_vm7, %v1234_v31, -1e+09  ;;  %v518_v37 = vsel %vm1734_vm7, %v1220_v32, -1e+09  ;;  %v854_v40 = vsel %vm2478_vm3, %v848_v35, -inf  ;;  %vm1755_vm9 = vcmp.ne.s32.totalorder %v365_v39, 0 }
  0x41   : > { %522 = vmax.xlane.f32.xlu2 %v521_v28  ;;  %v689_v41 = vsel %vm2478_vm3, %v683_v36, -inf  ;;  %v524_v42 = vsel %vm2478_vm3, %v518_v37, -inf  ;;  %v684_v48 = vsel %vm1750_vm8, %v1235_v44, -1e+09  ;;  %v1765_v49 = vsel %vm1755_vm9, %v1236_v46, -1e+09 }
  0x42   : > { %v1769_v50 = vsel %vm1750_vm8, %v1249_v47, -1e+09  ;;  %v692_v51 = vsel %vm2478_vm3, %v684_v48, -inf  ;;  %v695_v52 = vsel %vm2478_vm3, %v1765_v49, -inf  ;;  %v1781_v57 = vsel %vm1755_vm9, %v1250_v54, -1e+09 }
  0x43   : > { %v857_v53 = vsel %vm2478_vm3, %v1769_v50, -inf  ;;  %v1785_v58 = vsel %vm1750_vm8, %v1221_v55, -1e+09  ;;  %v1789_v59 = vsel %vm1755_vm9, %v1222_v56, -1e+09  ;;  %v860_v60 = vsel %vm2478_vm3, %v1781_v57, -inf }
  0x44   : > { %v527_v61 = vsel %vm2478_vm3, %v1785_v58, -inf  ;;  %v530_v62 = vsel %vm2478_vm3, %v1789_v59, -inf  ;;  %v1801_v1 = vsel %vm1712_vm4, %v337_v63, -1e+09  ;;  %v1805_v2 = vsel %vm1734_vm7, %v338_v0, -1e+09 }
  0x45   : > { %v375_v3 = vsel %vm2478_vm3, %v1801_v1, -inf  ;;  %v378_v4 = vsel %vm2478_vm3, %v1805_v2, -inf  ;;  %v340_v39 = vld [vmem:[%s1687_s13 + $0x18] sm:$0xff]  ;;  %v1839_v44 = vsel %vm1750_vm8, %v339_v38, -1e+09 }
  0x46   : > { %v1843_v46 = vsel %vm1755_vm9, %v340_v39, -1e+09  ;;  %v381_v43 = vsel %vm2478_vm3, %v1839_v44, -inf }
  0x47   : > { %v384_v54 = vsel %vm2478_vm3, %v1843_v46, -inf }
  0x48   : > { %855 = vmax.xlane.f32.xlu1 %v854_v40  ;;  %690 = vmax.xlane.f32.xlu0 %v689_v41 }
  0x49   : > { %525 = vmax.xlane.f32.xlu2 %v524_v42 }
  0x50   : > { %693 = vmax.xlane.f32.xlu0 %v692_v51  ;;  %696 = vmax.xlane.f32.xlu1 %v695_v52 }
  0x51   : > { %858 = vmax.xlane.f32.xlu2 %v857_v53 }
  0x58   : > { %861 = vmax.xlane.f32.xlu0 %v860_v60  ;;  %528 = vmax.xlane.f32.xlu1 %v527_v61 }
  0x59   : > { %531 = vmax.xlane.f32.xlu2 %v530_v62 }
  0x60   : > { %376 = vmax.xlane.f32.xlu0 %v375_v3  ;;  %379 = vmax.xlane.f32.xlu1 %v378_v4 }
  0xb3   : > { %v853_v5 = vpop.xlane.xlu1 %852  ;;  %v688_v6 = vpop.xlane.xlu0 %687 }
  0xb4   : > { %v863_v7 = vsub.f32 %v1718_v23, %v853_v5  ;;  %v698_v8 = vsub.f32 %v1722_v24, %v688_v6  ;;  %v523_v9 = vpop.xlane.xlu2 %522 }
  0xb5   : > { %v533_v33 = vsub.f32 %v1726_v25, %v523_v9 }
  0xb6   : > { %v867_v10 = vmul.f32 1.442695, %v863_v7  ;;  %v702_v11 = vmul.f32 1.442695, %v698_v8 }
  0xb7   : > { %v537_v25 = vmul.f32 1.442695, %v533_v33 }
  0xb8   : > { %1345 = vpow2.f32 %v867_v10 }
  0xb9   : > { %1347 = vpow2.f32 %v702_v11 }
  0xbb   : > { %v856_v12 = vpop.xlane.xlu1 %855  ;;  %v691_v13 = vpop.xlane.xlu0 %690 }
  0xbc   : > { %v864_v14 = vsub.f32 %v848_v35, %v856_v12  ;;  %v699_v15 = vsub.f32 %v683_v36, %v691_v13  ;;  %v526_v16 = vpop.xlane.xlu2 %525 }
  0xbd   : > { %v534_v17 = vsub.f32 %v518_v37, %v526_v16 }
  0xbe   : > { %v1813_v18 = vpop.eup %1345  ;;  %v869_v19 = vmul.f32 1.442695, %v864_v14  ;;  %v704_v20 = vmul.f32 1.442695, %v699_v15 }
  0xbf   : > { %v1815_v21 = vpop.eup %1347  ;;  %v539_v22 = vmul.f32 1.442695, %v534_v17  ;;  %v875_v23 = vsel %vm2478_vm3, %v1813_v18, 0.0  ;;  %v1243_v17 = vld [vmem:[%s1695_s5 + $0x50] sm:$0xff] }
  0xc0   : > { %1349 = vpow2.f32 %v869_v19  ;;  %876 = vadd.xlane.f32.xlu1 %v875_v23  ;;  %v710_v24 = vsel %vm2478_vm3, %v1815_v21, 0.0  ;;  %v1244_v19 = vld [vmem:[%s1695_s5 + $0x58] sm:$0xff] }
  0xc1   : > { %1351 = vpow2.f32 %v704_v20  ;;  %711 = vadd.xlane.f32.xlu2 %v710_v24  ;;  %v1257_v20 = vld [vmem:[%s1695_s5 + $0x70] sm:$0xff]  ;;  %v1258_v23 = vld [vmem:[%s1695_s5 + $0x78] sm:$0xff] }
  0xc2   : > { %1353 = vpow2.f32 %v539_v22  ;;  %v795_v22 = vpack.c.bf16 %v1244_v19, %v1243_v17  ;;  %v960_v24 = vpack.c.bf16 %v1258_v23, %v1257_v20 }
  0xc3   : > { %v694_v26 = vpop.xlane.xlu0 %693  ;;  %v697_v27 = vpop.xlane.xlu1 %696 }
  0xc4   : > { %v700_v28 = vsub.f32 %v684_v48, %v694_v26  ;;  %v701_v29 = vsub.f32 %v1765_v49, %v697_v27  ;;  %v859_v35 = vpop.xlane.xlu2 %858  ;;  %808 = vmatpush.bf16.msra.mxu2 %v795_v22  ;;  %973 = vmatpush.bf16.msra.mxu3 %v960_v24  ;;  %v1241_v26 = vld [vmem:[%s1695_s5 + $0x40] sm:$0xff]  ;;  %v1242_v27 = vld [vmem:[%s1695_s5 + $0x48] sm:$0xff] }
  0xc5   : > { %v865_v49 = vsub.f32 %v1769_v50, %v859_v35 }
  0xc6   : > { %v1822_v30 = vpop.eup %1349  ;;  %v706_v31 = vmul.f32 1.442695, %v700_v28  ;;  %v708_v41 = vmul.f32 1.442695, %v701_v29  ;;  %v1255_v28 = vld [vmem:[%s1695_s5 + $0x60] sm:$0xff]  ;;  %v794_v29 = vpack.c.bf16 %v1242_v27, %v1241_v26 }
  0xc7   : > { %v1824_v32 = vpop.eup %1351  ;;  %v878_v34 = vsel %vm2478_vm3, %v1822_v30, 0.0  ;;  %v871_v55 = vmul.f32 1.442695, %v865_v49 }
  0xc8   : > { %v1829_v36 = vpop.eup %1353  ;;  %1355 = vpow2.f32 %v706_v31  ;;  %v713_v37 = vsel %vm2478_vm3, %v1824_v32, 0.0  ;;  %v1256_v31 = vld [vmem:[%s1695_s5 + $0x68] sm:$0xff]  ;;  %809 = vmatpush.bf16.msra.mxu2 %v794_v29  ;;  %v1227_v29 = vld [vmem:[%s1695_s5 + $0x20] sm:$0xff] }
  0xc9   : > { %879 = vadd.xlane.f32.xlu2 %v878_v34  ;;  %v548_v40 = vsel %vm2478_vm3, %v1829_v36, 0.0  ;;  %714 = vadd.xlane.f32.xlu0 %v713_v37  ;;  %1357 = vpow2.f32 %v708_v41  ;;  %v959_v34 = vpack.c.bf16 %v1256_v31, %v1255_v28  ;;  %v1228_v31 = vld [vmem:[%s1695_s5 + $0x28] sm:$0xff] }
  0xca   : > { %549 = vadd.xlane.f32.xlu1 %v548_v40  ;;  %1359 = vpow2.f32 %v537_v25 }
  0xcb   : > { %v862_v42 = vpop.xlane.xlu0 %861  ;;  %v529_v47 = vpop.xlane.xlu1 %528  ;;  %974 = vmatpush.bf16.msra.mxu3 %v959_v34 }
  0xcc   : > { %v866_v48 = vsub.f32 %v1781_v57, %v862_v42  ;;  %v535_v51 = vsub.f32 %v1785_v58, %v529_v47  ;;  %v532_v56 = vpop.xlane.xlu2 %531 }
  0xcd   : > { %v536_v62 = vsub.f32 %v1789_v59, %v532_v56 }
  0xce   : > { %v1848_v52 = vpop.eup %1355  ;;  %v873_v53 = vmul.f32 1.442695, %v866_v48  ;;  %v541_v50 = vmul.f32 1.442695, %v535_v51 }
  0xcf   : > { %v716_v45 = vsel %vm2478_vm3, %v1848_v52, 0.0  ;;  %v1856_v57 = vpop.eup %1357  ;;  %v543_v7 = vmul.f32 1.442695, %v536_v62 }
  0xd0   : > { %1361 = vpow2.f32 %v873_v53  ;;  %v1860_v63 = vpop.eup %1359  ;;  %v719_v5 = vsel %vm2478_vm3, %v1856_v57, 0.0  ;;  %v1229_v53 = vld [vmem:[%s1695_s5 + $0x30] sm:$0xff] }
  0xd1   : > { %382 = vmax.xlane.f32.xlu2 %v381_v43  ;;  %385 = vmax.xlane.f32.xlu0 %v384_v54  ;;  %1363 = vpow2.f32 %v871_v55  ;;  %v1230_v43 = vld [vmem:[%s1695_s5 + $0x38] sm:$0xff] }
  0xd2   : > { %717 = vadd.xlane.f32.xlu1 %v716_v45  ;;  %1365 = vpow2.f32 %v541_v50  ;;  %v630_v50 = vpack.c.bf16 %v1230_v43, %v1229_v53 }
  0xd3   : > { %v377_v58 = vpop.xlane.xlu0 %376  ;;  %v380_v60 = vpop.xlane.xlu1 %379 }
  0xd4   : > { %v387_v61 = vsub.f32 %v1801_v1, %v377_v58  ;;  %v388_v0 = vsub.f32 %v1805_v2, %v380_v60  ;;  %v545_v1 = vsel %vm2478_vm3, %v1860_v63, 0.0  ;;  %643 = vmatpush.bf16.msra.mxu1 %v630_v50 }
  0xd6   : > { %v1863_v3 = vpop.eup %1361  ;;  %v391_v4 = vmul.f32 1.442695, %v387_v61  ;;  %v393_v59 = vmul.f32 1.442695, %v388_v0 }
  0xd7   : > { %v884_v6 = vsel %vm2478_vm3, %v1863_v3, 0.0  ;;  %v1871_v8 = vpop.eup %1363 }
  0xd8   : > { %1367 = vpow2.f32 %v391_v4  ;;  %v1873_v2 = vpop.eup %1365  ;;  %v881_v11 = vsel %vm2478_vm3, %v1871_v8, 0.0 }
  0xd9   : > { %720 = vadd.xlane.f32.xlu2 %v719_v5  ;;  %546 = vadd.xlane.f32.xlu0 %v545_v1  ;;  %1369 = vpow2.f32 %v543_v7  ;;  %v551_v10 = vsel %vm2478_vm3, %v1873_v2, 0.0 }
  0xda   : > { %885 = vadd.xlane.f32.xlu1 %v884_v6  ;;  %1371 = vpow2.f32 %v393_v59 }
  0xde   : > { %v1875_v9 = vpop.eup %1367 }
  0xdf   : > { %v399_v12 = vsel %vm2478_vm3, %v1875_v9, 0.0  ;;  %v1883_v13 = vpop.eup %1369 }
  0xe0   : > { %v1885_v14 = vpop.eup %1371  ;;  %v554_v16 = vsel %vm2478_vm3, %v1883_v13, 0.0 }
  0xe1   : > { %552 = vadd.xlane.f32.xlu2 %v551_v10  ;;  %882 = vadd.xlane.f32.xlu0 %v881_v11  ;;  %v402_v15 = vsel %vm2478_vm3, %v1885_v14, 0.0 }
  0xe2   : > { %400 = vadd.xlane.f32.xlu1 %v399_v12 }
  0xe9   : > { %403 = vadd.xlane.f32.xlu2 %v402_v15  ;;  %555 = vadd.xlane.f32.xlu0 %v554_v16 }
 0x133   : > { %v877_v33 = vpop.xlane.xlu1 %876 }
 0x134   : > { %1373 = vrcp.f32 %v877_v33  ;;  %v712_v35 = vpop.xlane.xlu2 %711  ;;  %v896_v54 = vand.u32 2147483647, %v877_v33  ;;  %v898_v45 = vand.u32 2147483648, %v877_v33  ;;  %vm892_vm11 = vweird.f32 %v877_v33 }
 0x135   : > { %1375 = vrcp.f32 %v712_v35  ;;  %v733_v60 = vand.u32 2147483648, %v712_v35  ;;  %vm727_vm13 = vweird.f32 %v712_v35  ;;  %v731_v62 = vand.u32 2147483647, %v712_v35 }
 0x136   : > { %vm1922_vm14 = vcmp.eq.f32.partialorder %v896_v54, 8.507059e+37  ;;  %v899_v15 = vor.u32 1.1754944e-38, %v898_v45 }
 0x137   : > { %v734_v17 = vor.u32 1.1754944e-38, %v733_v60  ;;  %vm732_vm1 = vcmp.eq.f32.partialorder %v731_v62, 8.507059e+37 }
 0x13a   : > { %v1899_v37 = vpop.eup %1373 }
 0x13b   : > { %v1376_v38 = vpop.eup %1375  ;;  %v888_v39 = vmul.f32 %v1899_v37, %v877_v33  ;;  %vm893_vm12 = vweird.f32 %v1899_v37 }
 0x13c   : > { %v723_v40 = vmul.f32 %v1376_v38, %v712_v35  ;;  %v1902_v41 = vpop.xlane.xlu2 %879  ;;  %v1904_v25 = vpop.xlane.xlu0 %714  ;;  %vm728_vm10 = vweird.f32 %v1376_v38  ;;  %vm1940_vm0 = vmor %vm892_vm11, %vm893_vm12 }
 0x13d   : > { %v889_v42 = vsub.f32 1.0, %v888_v39  ;;  %v1906_v47 = vpop.xlane.xlu1 %549  ;;  %1377 = vrcp.f32 %v1902_v41  ;;  %vm1927_vm15 = vmor %vm727_vm13, %vm728_vm10  ;;  %vm907_vm2 = vweird.f32 %v1902_v41  ;;  %v911_v26 = vand.u32 2147483647, %v1902_v41 }
 0x13e   : > { %v724_v48 = vsub.f32 1.0, %v723_v40  ;;  %1379 = vrcp.f32 %v1906_v47  ;;  %v583_v33 = vand.u32 2147483648, %v1906_v47  ;;  %v748_v53 = vand.u32 2147483648, %v1904_v25 }
 0x13f   : > { %v890_v49 = vmul.f32 %v1899_v37, %v889_v42  ;;  %1381 = vrcp.f32 %v1904_v25  ;;  %vm2008_vm7 = vcmp.eq.f32.partialorder %v911_v26, 8.507059e+37  ;;  %vm742_vm8 = vweird.f32 %v1904_v25 }
 0x140   : > { %v725_v51 = vmul.f32 %v1376_v38, %v724_v48  ;;  %v913_v48 = vand.u32 2147483648, %v1902_v41  ;;  %v749_v1 = vor.u32 1.1754944e-38, %v748_v53  ;;  %vm577_vm11 = vweird.f32 %v1906_v47 }
 0x141   : > { %v891_v58 = vadd.f32 %v1899_v37, %v890_v49 }
 0x142   : > { %v726_v55 = vadd.f32 %v1376_v38, %v725_v51  ;;  %v746_v51 = vand.u32 2147483647, %v1904_v25 }
 0x143   : > { %v1914_v56 = vpop.eup %1377  ;;  %v895_v20 = vsel %vm1940_vm0, %v1899_v37, %v891_v58  ;;  %v581_v58 = vand.u32 2147483647, %v1906_v47 }
 0x144   : > { %v1918_v61 = vpop.eup %1379  ;;  %v903_v0 = vmul.f32 %v1914_v56, %v1902_v41  ;;  %v383_v4 = vpop.xlane.xlu2 %382  ;;  %v900_v35 = vsel %vm1922_vm14, %v899_v15, %v895_v20  ;;  %vm908_vm4 = vweird.f32 %v1914_v56  ;;  %vm747_vm10 = vcmp.eq.f32.partialorder %v746_v51, 8.507059e+37 }
 0x145   : > { %v386_v5 = vpop.xlane.xlu0 %385  ;;  %v1931_v7 = vpop.xlane.xlu1 %717  ;;  %v389_v59 = vsub.f32 %v1839_v44, %v383_v4  ;;  %v730_v44 = vsel %vm1927_vm15, %v1376_v38, %v726_v55  ;;  %v1967_v39 = vmul.f32 %v1813_v18, %v900_v35  ;;  %v629_v18 = vpack.c.bf16 %v1228_v31, %v1227_v29  ;;  %vm2004_vm6 = vmor %vm907_vm2, %vm908_vm4 }
 0x146   : > { %v390_v10 = vsub.f32 %v1843_v46, %v386_v5  ;;  %v1935_v11 = vpop.eup %1381  ;;  %v904_v16 = vsub.f32 1.0, %v903_v0  ;;  %1383 = vrcp.f32 %v1931_v7  ;;  %v573_v46 = vmul.f32 %v1918_v61, %v1906_v47 }
 0x147   : > { %v738_v19 = vmul.f32 %v1935_v11, %v1904_v25  ;;  %v395_v23 = vmul.f32 1.442695, %v389_v59  ;;  %v735_v28 = vsel %vm732_vm1, %v734_v17, %v730_v44  ;;  %1251 = vst.msk [vmem:[%s1979_s27 + $0x60] sm:$0xff] %vm2478_vm3, %v1967_v39  ;;  %vm743_vm5 = vweird.f32 %v1935_v11  ;;  %644 = vmatpush.bf16.msra.mxu1 %v629_v18 }
 0x148   : > { %v905_v22 = vmul.f32 %v1914_v56, %v904_v16  ;;  %v397_v24 = vmul.f32 1.442695, %v390_v10  ;;  %v1961_v34 = vmul.f32 %v1815_v21, %v735_v28  ;;  %v574_v37 = vsub.f32 1.0, %v573_v46  ;;  %vm744_vm9 = vmor %vm742_vm8, %vm743_vm5 }
 0x149   : > { %v739_v27 = vsub.f32 1.0, %v738_v19  ;;  %1385 = vpow2.f32 %v395_v23  ;;  %v763_v55 = vand.u32 2147483648, %v1931_v7  ;;  %v2015_v4 = vor.u32 1.1754944e-38, %v583_v33 }
 0x14a   : > { %1387 = vpow2.f32 %v397_v24  ;;  %v906_v42 = vadd.f32 %v1914_v56, %v905_v22  ;;  %1237 = vst.msk [vmem:[%s1979_s27 + $0x40] sm:$0xff] %vm2478_vm3, %v1961_v34  ;;  %v575_v50 = vmul.f32 %v1918_v61, %v574_v37  ;;  %v914_v5 = vor.u32 1.1754944e-38, %v913_v48 }
 0x14b   : > { %v740_v38 = vmul.f32 %v1935_v11, %v739_v27  ;;  %v761_v25 = vand.u32 2147483647, %v1931_v7  ;;  %v2026_v10 = vor.u32 1.1754944e-38, %v763_v55  ;;  %vm578_vm12 = vweird.f32 %v1918_v61 }
 0x14c   : > { %v1969_v40 = vpop.eup %1383  ;;  %v1974_v21 = vpop.xlane.xlu2 %720  ;;  %v910_v41 = vsel %vm2004_vm6, %v1914_v56, %v906_v42  ;;  %v2036_v44 = vadd.f32 %v1918_v61, %v575_v50  ;;  %vm2092_vm1 = vcmp.eq.f32.partialorder %v581_v58, 8.507059e+37 }
 0x14d   : > { %v1976_v49 = vpop.xlane.xlu0 %546  ;;  %v753_v43 = vmul.f32 %v1969_v40, %v1931_v7  ;;  %v1988_v54 = vpop.xlane.xlu1 %885  ;;  %1389 = vrcp.f32 %v1974_v21  ;;  %v741_v45 = vadd.f32 %v1935_v11, %v740_v38  ;;  %v915_v19 = vsel %vm2008_vm7, %v914_v5, %v910_v41 }
 0x14e   : > { %1391 = vrcp.f32 %v1988_v54  ;;  %v941_v17 = vand.u32 2147483647, %v1988_v54  ;;  %v778_v23 = vand.u32 2147483648, %v1974_v21  ;;  %v916_v31 = vmul.f32 %v1822_v30, %v915_v19 }
 0x14f   : > { %v2013_v0 = vpop.eup %1385  ;;  %1393 = vrcp.f32 %v1976_v49  ;;  %v754_v59 = vsub.f32 1.0, %v753_v43  ;;  %v745_v56 = vsel %vm744_vm9, %v1935_v11, %v741_v45  ;;  %v943_v11 = vand.u32 2147483648, %v1988_v54  ;;  %vm2145_vm9 = vmor %vm577_vm11, %vm578_vm12 }
 0x150   : > { %v2021_v6 = vpop.eup %1387  ;;  %v405_v12 = vsel %vm2478_vm3, %v2013_v0, 0.0  ;;  %v750_v46 = vsel %vm747_vm10, %v749_v1, %v745_v56  ;;  %v568_v38 = vand.u32 2147483648, %v1976_v49  ;;  %vm758_vm14 = vweird.f32 %v1969_v40  ;;  %1252 = vst.msk [vmem:[%s1979_s27 + $0x68] sm:$0xff] %vm2478_vm3, %v916_v31 }
 0x151   : > { %v408_v15 = vsel %vm2478_vm3, %v2021_v6, 0.0  ;;  %406 = vadd.xlane.f32.xlu0 %v405_v12  ;;  %v751_v24 = vmul.f32 %v1824_v32, %v750_v46  ;;  %v755_v28 = vmul.f32 %v1969_v40, %v754_v59  ;;  %v566_v32 = vand.u32 2147483647, %v1976_v49 }
 0x152   : > { %409 = vadd.xlane.f32.xlu1 %v408_v15  ;;  %v776_v48 = vand.u32 2147483647, %v1974_v21  ;;  %v952_v51 = vpack.c.bf16 %v916_v31, %v1967_v39  ;;  %v2076_v53 = vor.u32 1.1754944e-38, %v943_v11  ;;  %v2078_v43 = vor.u32 1.1754944e-38, %v778_v23 }
 0x153   : > { %v2033_v16 = vpop.eup %1389  ;;  %1238 = vst.msk [vmem:[%s1979_s27 + $0x48] sm:$0xff] %vm2478_vm3, %v751_v24  ;;  %v787_v42 = vpack.c.bf16 %v751_v24, %v1961_v34  ;;  %vm562_vm15 = vweird.f32 %v1976_v49  ;;  %v2084_v34 = vadd.f32 %v1969_v40, %v755_v28  ;;  %vm2097_vm4 = vcmp.eq.f32.partialorder %v566_v32, 8.507059e+37 }
 0x154   : > { %v2041_v20 = vpop.eup %1391  ;;  %v768_v22 = vmul.f32 %v2033_v16, %v1974_v21  ;;  %v2050_v26 = vpop.xlane.xlu2 %552  ;;  %1259 = vmatmul.msk.bf16.vlgmr.msra.gmra.mxu3 %vm2478_vm3, %v952_v51  ;;  %v569_v62 = vor.u32 1.1754944e-38, %v568_v38  ;;  %vm2110_vm8 = vcmp.eq.f32.partialorder %v761_v25, 8.507059e+37  ;;  %vm2134_vm10 = vcmp.eq.f32.partialorder %v941_v17, 8.507059e+37 }
 0x155   : > { %v2052_v27 = vpop.xlane.xlu0 %882  ;;  %v933_v29 = vmul.f32 %v2041_v20, %v1988_v54  ;;  %1395 = vrcp.f32 %v2050_v26  ;;  %v2059_v33 = vpop.xlane.xlu1 %400  ;;  %1245 = vmatmul.msk.bf16.vlgmr.msra.gmra.mxu2 %vm2478_vm3, %v787_v42  ;;  %v598_v39 = vand.u32 2147483648, %v2050_v26  ;;  %v596_v1 = vand.u32 2147483647, %v2050_v26 }
 0x156   : > { %v2061_v35 = vpop.eup %1393  ;;  %v769_v37 = vsub.f32 1.0, %v768_v22  ;;  %1397 = vrcp.f32 %v2059_v33  ;;  %v420_v15 = vand.u32 2147483647, %v2059_v33  ;;  %v422_v56 = vand.u32 2147483648, %v2059_v33 }
 0x157   : > { %v934_v30 = vsub.f32 1.0, %v933_v29  ;;  %v558_v18 = vmul.f32 %v2061_v35, %v1976_v49  ;;  %1399 = vrcp.f32 %v2052_v27  ;;  %vm563_vm7 = vweird.f32 %v2061_v35 }
 0x158   : > { %v770_v45 = vmul.f32 %v2033_v16, %v769_v37  ;;  %v2126_v25 = vor.u32 1.1754944e-38, %v598_v39  ;;  %v928_v22 = vand.u32 2147483648, %v2052_v27  ;;  %v926_v31 = vand.u32 2147483647, %v2052_v27  ;;  %vm2171_vm5 = vmor %vm562_vm15, %vm563_vm7 }
 0x159   : > { %v559_v55 = vsub.f32 1.0, %v558_v18  ;;  %v935_v41 = vmul.f32 %v2041_v20, %v934_v30  ;;  %vm2158_vm3 = vcmp.eq.f32.partialorder %v776_v48, 8.507059e+37  ;;  %v2163_v51 = vor.u32 1.1754944e-38, %v422_v56 }
 0x15a   : > { %v2124_v11 = vadd.f32 %v2033_v16, %v770_v45  ;;  %vm2178_vm13 = vcmp.eq.f32.partialorder %v420_v15, 8.507059e+37  ;;  %vm2521_vm15 = vweird.f32 %v1931_v7  ;;  %vm2193_vm0 = vcmp.eq.f32.partialorder %v926_v31, 8.507059e+37 }
 0x15b   : > { %v2102_v5 = vpop.eup %1395  ;;  %v560_v58 = vmul.f32 %v2061_v35, %v559_v55  ;;  %v2150_v17 = vadd.f32 %v2041_v20, %v935_v41  ;;  %v929_v41 = vor.u32 1.1754944e-38, %v928_v22  ;;  %vm2188_vm7 = vmor %vm2521_vm15, %vm758_vm14  ;;  %v580_v7 = vsel %vm2145_vm9, %v1918_v61, %v2036_v44 }
 0x15c   : > { %v588_v12 = vmul.f32 %v2102_v5, %v2050_v26  ;;  %v2119_v46 = vpop.xlane.xlu2 %403  ;;  %v2130_v23 = vpop.eup %1397  ;;  %vm2529_vm15 = vweird.f32 %v1988_v54 }
 0x15d   : > { %v2121_v19 = vpop.xlane.xlu0 %555  ;;  %1401 = vrcp.f32 %v2119_v46  ;;  %v561_v28 = vadd.f32 %v2061_v35, %v560_v58  ;;  %v437_v37 = vand.u32 2147483648, %v2119_v46  ;;  %v412_v38 = vmul.f32 %v2130_v23, %v2059_v33  ;;  %v2156_v30 = vpop.eup %1399 }
 0x15e   : > { %v589_v29 = vsub.f32 1.0, %v588_v12  ;;  %v435_v42 = vand.u32 2147483647, %v2119_v46  ;;  %1403 = vrcp.f32 %v2121_v19  ;;  %vm417_vm2 = vweird.f32 %v2130_v23 }
 0x15f   : > { %v413_v48 = vsub.f32 1.0, %v412_v38  ;;  %v918_v39 = vmul.f32 %v2156_v30, %v2052_v27  ;;  %vm923_vm6 = vweird.f32 %v2156_v30  ;;  %v2197_v12 = vor.u32 1.1754944e-38, %v437_v37 }
 0x160   : > { %v590_v47 = vmul.f32 %v2102_v5, %v589_v29  ;;  %v565_v15 = vsel %vm2171_vm5, %v2061_v35, %v561_v28  ;;  %vm2209_vm14 = vcmp.eq.f32.partialorder %v435_v42, 8.507059e+37  ;;  %v611_v37 = vand.u32 2147483647, %v2121_v19 }
 0x161   : > { %v414_v22 = vmul.f32 %v2130_v23, %v413_v48  ;;  %v919_v29 = vsub.f32 1.0, %v918_v39  ;;  %v570_v38 = vsel %vm2097_vm4, %v569_v62, %v565_v15  ;;  %vm2528_vm5 = vweird.f32 %v2041_v20  ;;  %v477_v15 = vld [vmem:[%s1695_s5] sm:$0xff] }
 0x162   : > { %vm2220_vm12 = vmor %vm2529_vm15, %vm2528_vm5  ;;  %v2225_v44 = vadd.f32 %v2102_v5, %v590_v47  ;;  %v613_v60 = vand.u32 2147483648, %v2121_v19  ;;  %v571_v62 = vmul.f32 %v1860_v63, %v570_v38  ;;  %vm2233_vm4 = vcmp.eq.f32.partialorder %v596_v1, 8.507059e+37 }
 0x163   : > { %v2206_v56 = vpop.eup %1401  ;;  %v920_v32 = vmul.f32 %v2156_v30, %v919_v29  ;;  %v585_v42 = vsel %vm2092_vm1, %v2015_v4, %v580_v7  ;;  %v760_v47 = vsel %vm2188_vm7, %v1969_v40, %v2084_v34  ;;  %vm2534_vm5 = vweird.f32 %v2033_v16  ;;  %v479_v40 = vld [vmem:[%s1695_s5 + $0x10] sm:$0xff]  ;;  %v480_v34 = vld [vmem:[%s1695_s5 + $0x18] sm:$0xff]  ;;  %v478_v7 = vld [vmem:[%s1695_s5 + $0x8] sm:$0xff]  ;;  %s1034_s5 = scalar_lea.hbm %s2476_s4, %s1269_s7 }
 0x164   : > { %v427_v35 = vmul.f32 %v2206_v56, %v2119_v46  ;;  %v2231_v28 = vpop.eup %1403  ;;  %vm432_vm9 = vweird.f32 %v2206_v56  ;;  %vm2535_vm15 = vweird.f32 %v1974_v21  ;;  %v415_v1 = vadd.f32 %v2130_v23, %v414_v22  ;;  %s1037_s14 = sshll.u32 %s1034_s5, 4  ;;  %s1038_s14 = int_to_ptr.hbm [resolvable:$true] %s1037_s14 }
 0x165   : > { %vm2250_vm11 = vmor %vm2535_vm15, %vm2534_vm5  ;;  %v603_v4 = vmul.f32 %v2231_v28, %v2121_v19  ;;  %v586_v50 = vmul.f32 %v1829_v36, %v585_v42  ;;  %vm2538_vm1 = vcmask 261120   ;;  %vm2539_vm7 = vweird.f32 %v2059_v33  ;;  %s1483_s22 = sshra.s32 %s1038_s14, 4  ;;  %s1484_s22 = int_to_ptr.hbm [resolvable:$true] %s1483_s22 }
 0x166   : > { %v428_v45 = vsub.f32 1.0, %v427_v35  ;;  %1223 = vst.msk [vmem:[%s1979_s27 + $0x20] sm:$0xff] %vm2538_vm1, %v571_v62  ;;  %vm2266_vm5 = vmor %vm2539_vm7, %vm417_vm2  ;;  %v921_v48 = vadd.f32 %v2156_v30, %v920_v32  ;;  %v765_v39 = vsel %vm2110_vm8, %v2026_v10, %v760_v47  ;;  %v775_v36 = vsel %vm2250_vm11, %v2033_v16, %v2124_v11  ;;  %s1485_s24 = scalar_lea.hbm %s1484_s22, 128  ;;  %p1490_p8 = scmp.lt.s32.totalorder %s1484_s22, %s2476_s4 }
 0x167   : > { %v940_v33 = vsel %vm2220_vm12, %v2041_v20, %v2150_v17  ;;  %vm2542_vm2 = vweird.f32 %v2052_v27  ;;  %v604_v59 = vsub.f32 1.0, %v603_v4  ;;  %vm2545_vm8 = vmmov %vm2538_vm1  ;;  %v622_v16 = vpack.c.bf16 %v586_v50, %v571_v62  ;;  %p1486_p5 = scmp.ne.s32.totalorder %s1484_s22, %s1485_s24 }
 0x168   : > { %vm2286_vm15 = vmor %vm2542_vm2, %vm923_vm6  ;;  %v429_v10 = vmul.f32 %v2206_v56, %v428_v45  ;;  %1224 = vst.msk [vmem:[%s1979_s27 + $0x28] sm:$0xff] %vm2545_vm8, %v586_v50  ;;  %v766_v11 = vmul.f32 %v1848_v52, %v765_v39  ;;  %v780_v20 = vsel %vm2158_vm3, %v2078_v43, %v775_v36  ;;  %v945_v17 = vsel %vm2134_vm10, %v2076_v53, %v940_v33 }
 0x169   : > { %v925_v27 = vsel %vm2286_vm15, %v2156_v30, %v921_v48  ;;  %v482_v22 = vpack.c.bf16 %v480_v34, %v479_v40  ;;  %vm2546_vm6 = vweird.f32 %v2119_v46  ;;  %v605_v43 = vmul.f32 %v2231_v28, %v604_v59  ;;  %vm2549_vm12 = vmmov %vm2538_vm1  ;;  %p1487_p6 = pnand %p1486_p5, %p1641_p9 }
 0x16a   : > { %v430_v29 = vadd.f32 %v2206_v56, %v429_v10  ;;  %vm2310_vm11 = vmor %vm2546_vm6, %vm432_vm9  ;;  %vm608_vm3 = vweird.f32 %v2231_v28  ;;  %1231 = vmatmul.msk.bf16.vlgmr.msra.gmra.mxu1 %vm2549_vm12, %v622_v16  ;;  %v781_v53 = vmul.f32 %v1856_v57, %v780_v20  ;;  %v930_v24 = vsel %vm2193_vm0, %v929_v41, %v925_v27 }
 0x16b   : > { %vm2550_vm10 = vmmov %vm2538_vm1  ;;  %v946_v46 = vmul.f32 %v1863_v3, %v945_v17  ;;  %495 = vmatpush.bf16.msra.mxu0 %v482_v22  ;;  %v481_v30 = vpack.c.bf16 %v478_v7, %v477_v15  ;;  %v419_v18 = vsel %vm2266_vm5, %v2130_v23, %v415_v1  ;;  %vm2551_vm9 = vweird.f32 %v2102_v5  ;;  %p1488_p7 = pneg %p1487_p6 }
 0x16c   : > { %1239 = vst.msk [vmem:[%s1979_s27 + $0x50] sm:$0xff] %vm2550_vm10, %v766_v11  ;;  %vm2552_vm1 = vweird.f32 %v2050_v26  ;;  %v606_v58 = vadd.f32 %v2231_v28, %v605_v43  ;;  %vm2555_vm0 = vmmov %vm2545_vm8  ;;  %v788_v3 = vpack.c.bf16 %v781_v53, %v766_v11  ;;  %v931_v41 = vmul.f32 %v1871_v8, %v930_v24 }
 0x16d   : > { %vm2330_vm7 = vmor %vm2552_vm1, %vm2551_vm9  ;;  %1240 = vst.msk [vmem:[%s1979_s27 + $0x58] sm:$0xff] %vm2555_vm0, %v781_v53  ;;  %v424_v38 = vsel %vm2178_vm13, %v2163_v51, %v419_v18  ;;  %vm607_vm5 = vweird.f32 %v2121_v19  ;;  %v434_v23 = vsel %vm2310_vm11, %v2206_v56, %v430_v29  ;;  %v614_v51 = vor.u32 1.1754944e-38, %v613_v60 }
 0x16e   : > { %vm2556_vm2 = vmmov %vm2555_vm0  ;;  %v425_v26 = vmul.f32 %v1875_v9, %v424_v38  ;;  %v595_v8 = vsel %vm2330_vm7, %v2102_v5, %v2225_v44  ;;  %v953_v9 = vpack.c.bf16 %v946_v46, %v931_v41  ;;  %v439_v55 = vsel %vm2209_vm14, %v2197_v12, %v434_v23 }
 0x16f   : > { %1254 = vst.msk [vmem:[%s1979_s27 + $0x78] sm:$0xff] %vm2556_vm2, %v946_v46  ;;  %vm609_vm13 = vmor %vm607_vm5, %vm608_vm3  ;;  %v600_v5 = vsel %vm2233_vm4, %v2126_v25, %v595_v8  ;;  %vm612_vm6 = vcmp.eq.f32.partialorder %v611_v37, 8.507059e+37  ;;  %496 = vmatpush.bf16.msra.mxu0 %v481_v30  ;;  %v440_v56 = vmul.f32 %v1885_v14, %v439_v55 }
 0x170   : > { %vm2557_vm15 = vmmov %vm2555_vm0  ;;  %v601_v61 = vmul.f32 %v1873_v2, %v600_v5  ;;  %v610_v44 = vsel %vm609_vm13, %v2231_v28, %v606_v58 }
 0x171   : > { %1246 = vmatmul.msk.bf16.gmra.mxu2 %vm2557_vm15, %v788_v3  ;;  %vm2558_vm8 = vmmov %vm2555_vm0  ;;  %v615_v31 = vsel %vm612_vm6, %v614_v51, %v610_v44  ;;  %v475_v12 = vpack.c.bf16 %v440_v56, %v425_v26 }
 0x172   : > { %1253 = vst.msk [vmem:[%s1979_s27 + $0x70] sm:$0xff] %vm2558_vm8, %v931_v41  ;;  %vm2559_vm11 = vmmov %vm2555_vm0  ;;  %v616_v25 = vmul.f32 %v1883_v13, %v615_v31 }
 0x173   : > { %471 = vst.msk [vmem:[%s1979_s27] sm:$0xff] %vm2559_vm11, %v425_v26  ;;  %vm2560_vm3 = vmmov %vm2555_vm0 }
 0x174   : > { %1260 = vmatmul.msk.bf16.gmra.mxu3 %vm2560_vm3, %v953_v9  ;;  %vm2561_vm14 = vmmov %vm2555_vm0  ;;  %v623_v14 = vpack.c.bf16 %v616_v25, %v601_v61 }
 0x175   : > { %472 = vst.msk [vmem:[%s1979_s27 + $0x8] sm:$0xff] %vm2561_vm14, %v440_v56  ;;  %vm2562_vm4 = vmmov %vm2555_vm0 }
 0x176   : > { %1225 = vst.msk [vmem:[%s1979_s27 + $0x30] sm:$0xff] %vm2562_vm4, %v601_v61  ;;  %vm2563_vm12 = vmmov %vm2555_vm0 }
 0x177   : > { %1217 = vmatmul.msk.bf16.vlgmr.msra.gmra.mxu0 %vm2563_vm12, %v475_v12  ;;  %vm2564_vm10 = vmmov %vm2555_vm0 }
 0x178   : > { %1226 = vst.msk [vmem:[%s1979_s27 + $0x38] sm:$0xff] %vm2564_vm10, %v616_v25  ;;  %vm2565_vm9 = vmmov %vm2555_vm0 }
 0x179   : > { %vm2566_vm6 = vmmov %vm2560_vm3 }
 0x17a   : > { %1232 = vmatmul.msk.bf16.gmra.mxu1 %vm2565_vm9, %v623_v14  ;;  %vm2567_vm11 = vmmov %vm2560_vm3 }
 0x17b   : > { %vm2568_vm14 = vmmov %vm2560_vm3 }
 0x17c   : > { %vm2569_vm4 = vmmov %vm2560_vm3 }
 0x1c4   : > { %v407_v19 = vpop.xlane.xlu0 %406 }
 0x1c5   : > { %v410_v2 = vpop.xlane.xlu1 %409  ;;  %v452_v47 = vand.u32 2147483648, %v407_v19  ;;  %vm446_vm7 = vweird.f32 %v407_v19  ;;  %v450_v1 = vand.u32 2147483647, %v407_v19 }
 0x1c6   : > { %1405 = vrcp.f32 %v410_v2  ;;  %v467_v54 = vand.u32 2147483648, %v410_v2  ;;  %v465_v42 = vand.u32 2147483647, %v410_v2  ;;  %vm461_vm5 = vweird.f32 %v410_v2 }
 0x1c7   : > { %1407 = vrcp.f32 %v407_v19  ;;  %v453_v40 = vor.u32 1.1754944e-38, %v452_v47  ;;  %vm451_vm8 = vcmp.eq.f32.partialorder %v450_v1, 8.507059e+37 }
 0x1c8   : > { %v468_v4 = vor.u32 1.1754944e-38, %v467_v54  ;;  %vm466_vm13 = vcmp.eq.f32.partialorder %v465_v42, 8.507059e+37 }
 0x1cc   : > { %v1406_v37 = vpop.eup %1405 }
 0x1cd   : > { %v1408_v35 = vpop.eup %1407  ;;  %v457_v60 = vmul.f32 %v1406_v37, %v410_v2  ;;  %vm462_vm1 = vweird.f32 %v1406_v37 }
 0x1ce   : > { %v442_v62 = vmul.f32 %v1408_v35, %v407_v19  ;;  %vm447_vm0 = vweird.f32 %v1408_v35  ;;  %vm463_vm2 = vmor %vm461_vm5, %vm462_vm1 }
 0x1cf   : > { %v458_v28 = vsub.f32 1.0, %v457_v60  ;;  %vm448_vm15 = vmor %vm446_vm7, %vm447_vm0 }
 0x1d0   : > { %v443_v13 = vsub.f32 1.0, %v442_v62 }
 0x1d1   : > { %v459_v32 = vmul.f32 %v1406_v37, %v458_v28 }
 0x1d2   : > { %v444_v63 = vmul.f32 %v1408_v35, %v443_v13 }
 0x1d3   : > { %v460_v45 = vadd.f32 %v1406_v37, %v459_v32 }
 0x1d4   : > { %v445_v50 = vadd.f32 %v1408_v35, %v444_v63 }
 0x1d5   : > { %v464_v34 = vsel %vm463_vm2, %v1406_v37, %v460_v45 }
 0x1d6   : > { %v449_v21 = vsel %vm448_vm15, %v1408_v35, %v445_v50  ;;  %v469_v48 = vsel %vm466_vm13, %v468_v4, %v464_v34 }
 0x1d7   : > { %v454_v39 = vsel %vm451_vm8, %v453_v40, %v449_v21  ;;  %v470_v36 = vmul.f32 %v2021_v6, %v469_v48  ;;  %v976_v11 = vpop.f32.mrf.mxu3 }
 0x1d8   : > { %v455_v33 = vmul.f32 %v2013_v0, %v454_v39  ;;  %v811_v49 = vpop.f32.mrf.mxu2 }
 0x1d9   : > { %474 = vst.msk [vmem:[%s1979_s27 + $0x18] sm:$0xff] %vm2566_vm6, %v470_v36  ;;  %825 = vrot.lane.b32.xlu0 %v811_v49, %s1560_s26 }
 0x1da   : > { %473 = vst.msk [vmem:[%s1979_s27 + $0x10] sm:$0xff] %vm2567_vm11, %v455_v33  ;;  %v476_v10 = vpack.c.bf16 %v470_v36, %v455_v33  ;;  %s1489_s27 = scalar_lea.hbm %s2476_s4, 256 }
 0x1db   : > { %p1491_p10 = scmp.lt.s32.totalorder %s1489_s27, %s1485_s24 }
 0x1dc   : > { %1218 = vmatmul.msk.bf16.gmra.mxu0 %vm2560_vm3, %v476_v10 }
 0x1dd   : > { %p1492_p13 = por %p1491_p10, %p1490_p8 }
 0x1df   : > { %v978_v7 = vpop.f32.mrf.mxu3  ;;  %p1493_p0 = pnand %p1492_p13, %p1488_p7 }
 0x1e0   : > { %v813_v59 = vpop.f32.mrf.mxu2 }
 0x1e7   : > { %v646_v16 = vpop.f32.mrf.mxu1 }
 0x1e8   : > { %660 = vrot.lane.b32.xlu2 %v646_v16, %s1561_s8 }
 0x1ef   : > { %v648_v0 = vpop.f32.mrf.mxu1 }
 0x1f0   : > { %990 = vrot.lane.b32.xlu2 %v976_v11, %s1562_s12  ;;  %662 = vrot.lane.b32.xlu0 %v648_v0, %s1561_s8 }
 0x1f4   : > { %v498_v6 = vpop.f32.mrf.mxu0  ;;  %v816_v15 = vpop.f32.mrf.mxu2 }
 0x1f5   : > { %508 = vst.msk [vmem:[%s2392_s11] sm:$0xff] %vm2568_vm14, %v498_v6 }
 0x1f7   : > { %v651_v20 = vpop.f32.mrf.mxu1  ;;  %v981_v22 = vpop.f32.mrf.mxu3 }
 0x1f8   : > { %827 = vrot.lane.b32.xlu2 %v813_v59, %s1560_s26  ;;  %664 = vrot.lane.b32.xlu1 %v651_v20, %s1561_s8 }
 0x1fc   : > { %v500_v27 = vpop.f32.mrf.mxu0  ;;  %v818_v17 = vpop.f32.mrf.mxu2 }
 0x1fd   : > { %509 = vst.msk [vmem:[%s2392_s11 + $0x8] sm:$0xff] %vm2569_vm4, %v500_v27  ;;  %831 = vrot.lane.b32.xlu0 %v818_v17, %s1560_s26 }
 0x1ff   : > { %v653_v29 = vpop.f32.mrf.mxu1 }
 0x200   : > { %829 = vrot.lane.b32.xlu1 %v816_v15, %s1560_s26  ;;  %666 = vrot.lane.b32.xlu2 %v653_v29, %s1561_s8 }
 0x201   : > { %1496 = shalt.err (!%p1493_p0)
}
 0x202   : > { %s1563_s23 = smov 128   ;;  %s1564_s26 = smov 8   ;;  %v983_v52 = vpop.f32.mrf.mxu3  ;;  %vm672_vm12 = vcmask 523520   ;;  %vm837_vm10 = vcmask 785920   ;;  %vm1002_vm9 = vcmask 1048320   ;;  %vm2570_vm1 = vmmov %vm2560_vm3 }
 0x203   : > { %1274 = dma.vmem_to_hbm [thread:$0]  (%p1641_p9), %s1036_s6, 2048, %s1038_s14, %s1017_s21, %s1563_s23, %s1563_s23, %s1564_s26   ;;  %vm2571_vm7 = vmmov %vm2570_vm1 }
 0x205   : > { %994 = vrot.lane.b32.xlu0 %v981_v22, %s1562_s12 }
 0x208   : > { %992 = vrot.lane.b32.xlu1 %v978_v7, %s1562_s12  ;;  %996 = vrot.lane.b32.xlu2 %v983_v52, %s1562_s12 }
 0x242   : > { %v661_v43 = vpop.permute.xlu2 %660 }
 0x243   : > { %673 = vst.msk [vmem:[%s2392_s11] sm:$0xff] %vm672_vm12, %v661_v43 }
 0x24a   : > { %v991_v24 = vpop.permute.xlu2 %990 }
 0x24b   : > { %v826_v53 = vpop.permute.xlu0 %825 }
 0x24c   : > { %838 = vst.msk [vmem:[%s2392_s11] sm:$0xff] %vm837_vm10, %v826_v53 }
 0x24d   : > { %1003 = vst.msk [vmem:[%s2392_s11] sm:$0xff] %vm1002_vm9, %v991_v24 }
 0x252   : > { %v828_v46 = vpop.permute.xlu2 %827 }
 0x259   : > { %v503_v30 = vpop.f32.mrf.mxu0 }
 0x25a   : > { %510 = vst.msk [vmem:[%s2392_s11 + $0x10] sm:$0xff] %vm2570_vm1, %v503_v30  ;;  %v667_v57 = vpop.permute.xlu2 %666 }
 0x261   : > { %v505_v58 = vpop.f32.mrf.mxu0 }
 0x262   : > { %v663_v18 = vpop.permute.xlu0 %662  ;;  %511 = vst.msk [vmem:[%s2392_s11 + $0x18] sm:$0xff] %vm2571_vm7, %v505_v58  ;;  %v997_v38 = vpop.permute.xlu2 %996 }
 0x263   : > { %674 = vst.msk [vmem:[%s2392_s11 + $0x8] sm:$0xff] %vm672_vm12, %v663_v18 }
 0x264   : > { %839 = vst.msk [vmem:[%s2392_s11 + $0x8] sm:$0xff] %vm837_vm10, %v828_v46 }
 0x265   : > { %676 = vst.msk [vmem:[%s2392_s11 + $0x18] sm:$0xff] %vm672_vm12, %v667_v57 }
 0x26a   : > { %v665_v3 = vpop.permute.xlu1 %664 }
 0x26b   : > { %675 = vst.msk [vmem:[%s2392_s11 + $0x10] sm:$0xff] %vm672_vm12, %v665_v3 }
 0x26f   : > { %v832_v41 = vpop.permute.xlu0 %831 }
 0x270   : > { %841 = vst.msk [vmem:[%s2392_s11 + $0x18] sm:$0xff] %vm837_vm10, %v832_v41 }
 0x271   : > { %1006 = vst.msk [vmem:[%s2392_s11 + $0x18] sm:$0xff] %vm1002_vm9, %v997_v38 }
 0x272   : > { %v830_v26 = vpop.permute.xlu1 %829 }
 0x273   : > { %840 = vst.msk [vmem:[%s2392_s11 + $0x10] sm:$0xff] %vm837_vm10, %v830_v26 }
 0x277   : > { %v995_v23 = vpop.permute.xlu0 %994 }
 0x278   : > { %1005 = vst.msk [vmem:[%s2392_s11 + $0x10] sm:$0xff] %vm1002_vm9, %v995_v23 }
 0x27a   : > { %v993_v8 = vpop.permute.xlu1 %992 }
 0x27b   : > { %1004 = vst.msk [vmem:[%s2392_s11 + $0x8] sm:$0xff] %vm1002_vm9, %v993_v8 }
 0x27c PF: > { %s1064_s28 = sand.u32 1, %s1535_s15   ;;  %p1284_p9 = pnand %p1203_p12, %p1648_p11 }
 0x27d   : > { %s1065_s8 = scalar_lea.sflag [#allocation4], %s1064_s28 }
 0x27e   : > { %p1285_p1 = pneg %p1284_p9 }
 0x280   : > { %1530 = dma.done.wait (%p1285_p1), %s1065_s8, 2048  }
 0x281   : > { %1532 = vsyncadd (%p1285_p1), %s1065_s8, 4294965248  ;;  %s24_s20 = sadd.s32 1, %s1555_s20   ;;  %s2572_s11 = sld [smem:[#allocation11_spill]] }
 0x282   : > { %p21_p2 = scmp.ge.s32.totalorder %s24_s20, 4   ;;  %s2573_s15 = smov %s1539_s16 }
 0x283   : > { %s2574_s16 = smov %s1543_s17  ;;  %s2575_s17 = smov %s1646_s29 }
 0x284   : > { %s2576_s18 = smov %s1551_s19  ;;  %23 = sbr.rel (!%p21_p2) target bundleno = 10 (0xa), region = 114 }
 0x287   : > { %s2577_s19 = smov %s2572_s11 }
 0x289   :  { %1071 = vsyncpa [#allocation3], 1 }
 0x28a   :  { %1073 = vsyncpa [#allocation3 + $0x1], 1 }
 0x28b   :  { %1074 = vsyncpa [#allocation6], 1 }
 0x28c   :  { %1076 = vsyncpa [#allocation6 + $0x1], 1 }
 0x28d   :  { %1077 = vsyncpa [#allocation4], 1 }
 0x28e   :  { %1079 = vsyncpa [#allocation4 + $0x1], 1 }

</bundles_post_ra>
